<compile_context>
chip_gen: v7x
topology: tpu7x:2x2x1
jax: 0.10.0
libtpu: 0.0.40
codegen_flags: <defaults>
</compile_context>

<pallas_src>
import math
from functools import partial

import numpy as np
import jax
import jax.numpy as jnp
from jax import lax
from jax.experimental import pallas as pl
from jax.experimental.pallas import tpu as pltpu

N_MODES = 2
LEAKY_SLOPE = 0.01


def get_mean_size(*values, factor=1):
    return int(math.ceil(float(np.mean(values)) * factor))


def _round_up(x, m):
    return ((x + m - 1) // m) * m


# ----------------------------- static layout plan ----------------------------

def _dims(style_size, bar_size, instrument_size):
    """Static sizes + slab row offsets (pure function of the constructor args)."""
    H = get_mean_size(bar_size, style_size)                        # bars_lstm hidden
    Hi = get_mean_size(instrument_size, style_size, factor=0.25)   # instruments_linear
    Hm = get_mean_size(N_MODES, style_size, factor=0.1)            # mode_linear
    Hb = get_mean_size(style_size, 1, factor=0.05)                 # bpm_linear
    HP, CPi = _round_up(H, 128), _round_up(Hi, 128)
    CPm, CPb = _round_up(Hm, 128), _round_up(Hb, 128)
    SP = _round_up(style_size, 128)
    KP = _round_up(bar_size + 1, 16)     # w_ih rows incl. fused-bias row (bf16 sublane tile = 16)
    W2 = max(CPi, CPm, CPb, SP)          # lane width of the f32 misc slab

    offs, row = {}, 0

    def _add(name, rows):
        nonlocal row
        offs[name] = row
        row += _round_up(rows, 8)        # f32 sublane tile = 8

    _add("w_instr", instrument_size)
    _add("b_instr", 1)
    _add("w_mode", N_MODES)
    _add("b_mode", 1)
    _add("w_bpm", 1)
    _add("b_bpm", 1)
    _add("w_l1", HP)
    _add("w_l2", CPi)
    _add("w_l3", CPm)
    _add("w_l4", CPb)
    _add("b_lin", 1)
    return dict(H=H, Hi=Hi, Hm=Hm, Hb=Hb, HP=HP, CPi=CPi, CPm=CPm, CPb=CPb,
                SP=SP, KP=KP, W2=W2, rows2=row, offs=offs)


# ------------------------------- Pallas kernel --------------------------------

def _style_encoder_kernel(bars_ref, instr_ref, mode_ref, bpm_ref,
                          lstm_w_ref, misc_ref, out_ref,
                          *, n_steps, batch, n_channels, dims):
    """Whole StyleEncoder forward in one invocation (everything resident in VMEM)."""
    f32, bf16 = jnp.float32, jnp.bfloat16
    HP, KP = dims["HP"], dims["KP"]
    CPi, CPm, CPb, SP = dims["CPi"], dims["CPm"], dims["CPb"], dims["SP"]
    offs = dims["offs"]
    Fi = instr_ref.shape[1]
    BP = bars_ref.shape[0] // n_steps          # sublane-padded batch per timestep

    def lrelu(v):                              # max(v, a*v): one fewer VALU op than where()
        return jnp.maximum(v, LEAKY_SLOPE * v)

    def m(name, rows, width):                  # static view into the packed f32 slab
        o = offs[name]
        return misc_ref[o:o + rows, 0:width]

    # ---- bars LSTM ------------------------------------------------------------
    # Hoisted input projection; the ones-column appended to bars picks up the fused
    # (b_ih + b_hh) bias row of the bf16 slab, so no separate bias add is needed.
    w_ihb = lstm_w_ref[0:KP, :]                                    # bf16 (KP, 4*HP)
    w_hh = lstm_w_ref[KP:KP + HP, :]                               # bf16 (HP, 4*HP)
    gates_x = jnp.dot(bars_ref[...].astype(bf16), w_ihb,
                      preferred_element_type=f32)                  # (T*BP, 4*HP) f32

    h = jnp.zeros((BP, HP), f32)
    c = jnp.zeros((BP, HP), f32)
    for t in range(n_steps):                   # short fixed T, static unroll
        g = (gates_x[t * BP:(t + 1) * BP, :]                       # sublane-aligned slice
             + jnp.dot(h.astype(bf16), w_hh, preferred_element_type=f32))
        i_g = jax.nn.sigmoid(g[:, 0 * HP:1 * HP])                  # 128-lane aligned gate slices
        f_g = jax.nn.sigmoid(g[:, 1 * HP:2 * HP])
        g_g = jnp.tanh(g[:, 2 * HP:3 * HP])
        o_g = jax.nn.sigmoid(g[:, 3 * HP:4 * HP])
        c = f_g * c + i_g * g_g
        h = o_g * jnp.tanh(c)
    h_last = h[0:batch, :]                                         # == lstm_out[:, -1]  (B, HP)

    # ---- small linears (+ leaky_relu); outputs 128-lane padded, pad lanes stay 0 ----
    instr_act = lrelu(jnp.dot(instr_ref[...], m("w_instr", Fi, CPi),
                              preferred_element_type=f32) + m("b_instr", 1, CPi))   # (NC*B, CPi)
    mode_act = lrelu(jnp.dot(mode_ref[...], m("w_mode", N_MODES, CPm),
                             preferred_element_type=f32) + m("b_mode", 1, CPm))     # (B, CPm)
    bpm_act = lrelu(bpm_ref[...] * m("w_bpm", 1, CPb) + m("b_bpm", 1, CPb))         # K=1 -> bcast

    # ---- final Linear over cat_with_broadcast([x1,x2,x3,x4]) as split matmuls ----
    # (back-to-back dot accumulations -> MRB-friendly on v7x)
    base = (jnp.dot(h_last, m("w_l1", HP, SP), preferred_element_type=f32)
            + jnp.dot(mode_act, m("w_l3", CPm, SP), preferred_element_type=f32)
            + jnp.dot(bpm_act, m("w_l4", CPb, SP), preferred_element_type=f32)
            + m("b_lin", 1, SP))                                                    # (B, SP)
    per_ch = jnp.dot(instr_act, m("w_l2", CPi, SP), preferred_element_type=f32)     # (NC*B, SP)

    # ---- combine(y, dim=channel), vectorized over channels ----
    # Broadcast `base` across channel groups with a tiny selector matmul
    # (sel[c*B+b, b] = 1) instead of an unaligned sublane concat.
    rows = n_channels * batch
    sel = (lax.broadcasted_iota(jnp.int32, (rows, batch), 0) % batch
           == lax.broadcasted_iota(jnp.int32, (rows, batch), 1)).astype(f32)        # (NC*B, B)
    y = lrelu(per_ch + jnp.dot(sel, base, preferred_element_type=f32))              # (NC*B, SP)
    row_sq = jnp.sum(y * y, axis=-1, keepdims=True)                                 # (NC*B, 1)

    # norm_c = sqrt(1 + sum over (batch, features) of y_c^2);
    # out = sum_c y_c * norm_c / sum_c norm_c  (matches the PyTorch `combine`)
    num = jnp.zeros((batch, SP), f32)
    den = jnp.zeros((1, 1), f32)
    for ch in range(n_channels):                                   # tiny (B,1) per-channel sums
        lo = ch * batch
        norm_c = jnp.sqrt(1.0 + jnp.sum(row_sq[lo:lo + batch, :], keepdims=True))   # (1, 1)
        num = num + y[lo:lo + batch, :] * norm_c
        den = den + norm_c
    out_ref[...] = num / den                                       # (B, SP), pad lanes are 0


# --------------------------- parameters (init + pack) -------------------------

def init_logical_params(key, style_size, bar_size, instrument_size):
    """PyTorch-shaped parameters (used by the pure-JAX reference)."""
    d = _dims(style_size, bar_size, instrument_size)
    H, Hi, Hm, Hb = d["H"], d["Hi"], d["Hm"], d["Hb"]
    D = H + Hi + Hm + Hb
    ks = jax.random.split(key, 12)
    r = lambda k, s: 0.1 * jax.random.normal(k, s, jnp.float32)
    return {
        "w_ih": r(ks[0], (4 * H, bar_size)),    # LSTM weight_ih_l0, gate order i,f,g,o
        "w_hh": r(ks[1], (4 * H, H)),
        "b_ih": r(ks[2], (4 * H,)),
        "b_hh": r(ks[3], (4 * H,)),
        "w_instr": r(ks[4], (Hi, instrument_size)),
        "b_instr": r(ks[5], (Hi,)),
        "w_mode": r(ks[6], (Hm, N_MODES)),
        "b_mode": r(ks[7], (Hm,)),
        "w_bpm": r(ks[8], (Hb, 1)),
        "b_bpm": r(ks[9], (Hb,)),
        "w_lin": r(ks[10], (style_size, D)),
        "b_lin": r(ks[11], (style_size,)),
    }


def pack_params(lp):
    """Pre-transpose + zero-pad + slab-pack all weights ONCE.

    Returns two slabs (instead of 13 separate arrays -> 2 DMA descriptors):
      * lstm_w (bf16): rows [0:bar_size]=w_ih^T, row bar_size = fused (b_ih+b_hh),
                       rows [KP:KP+H]=w_hh^T; gate k at lane offset k*HP.
      * misc_w (f32): remaining weights/biases stacked along sublanes at 8-aligned
                      static offsets, lane-padded to W2.
    INVARIANT: all padding regions are exactly zero -- the kernel's padded-lane math
    (h/c pad lanes staying 0, uncontaminated combine reductions) depends on it.
    """
    style_size = lp["w_lin"].shape[0]
    bar_size = lp["w_ih"].shape[1]
    instrument_size = lp["w_instr"].shape[1]
    d = _dims(style_size, bar_size, instrument_size)
    H, Hi, Hm, Hb = d["H"], d["Hi"], d["Hm"], d["Hb"]
    HP, KP, W2 = d["HP"], d["KP"], d["W2"]
    offs = d["offs"]

    w_ih = np.asarray(lp["w_ih"], np.float32)
    w_hh = np.asarray(lp["w_hh"], np.float32)
    b = np.asarray(lp["b_ih"], np.float32) + np.asarray(lp["b_hh"], np.float32)

    lstm = np.zeros((KP + HP, 4 * HP), np.float32)
    for k in range(4):                                     # gate order i, f, g, o
        lstm[0:bar_size, k * HP:k * HP + H] = w_ih[k * H:(k + 1) * H, :].T
        lstm[bar_size, k * HP:k * HP + H] = b[k * H:(k + 1) * H]      # fused bias row
        lstm[KP:KP + H, k * HP:k * HP + H] = w_hh[k * H:(k + 1) * H, :].T

    misc = np.zeros((d["rows2"], W2), np.float32)

    def put(name, mat):
        mat = np.asarray(mat, np.float32)
        misc[offs[name]:offs[name] + mat.shape[0], 0:mat.shape[1]] = mat

    put("w_instr", np.asarray(lp["w_instr"]).T)
    put("b_instr", np.asarray(lp["b_instr"])[None, :])
    put("w_mode", np.asarray(lp["w_mode"]).T)
    put("b_mode", np.asarray(lp["b_mode"])[None, :])
    put("w_bpm", np.asarray(lp["w_bpm"]).T)
    put("b_bpm", np.asarray(lp["b_bpm"])[None, :])
    w_lin = np.asarray(lp["w_lin"], np.float32)
    s0, s1, s2, s3, _ = np.cumsum([0, H, Hi, Hm, Hb])
    put("w_l1", w_lin[:, s0:s1].T)                         # x1 (LSTM) rows
    put("w_l2", w_lin[:, s1:s2].T)                         # x2 (instruments) rows
    put("w_l3", w_lin[:, s2:s3].T)                         # x3 (mode) rows
    put("w_l4", w_lin[:, s3:].T)                           # x4 (bpm) rows
    put("b_lin", np.asarray(lp["b_lin"])[None, :])

    return {"lstm_w": jnp.asarray(lstm, jnp.bfloat16),     # bf16 MXU operands for the recurrence
            "misc_w": jnp.asarray(misc, jnp.float32)}


# ---------------------------------- forward -----------------------------------

@partial(jax.jit, static_argnames=("style_size",))
def style_encoder_forward(params, bars, instruments_features, mode, bpm, *, style_size):
    B, T, bar_size = bars.shape
    NC, instrument_size = instruments_features.shape[1], instruments_features.shape[2]
    d = _dims(style_size, bar_size, instrument_size)
    SP, KP = d["SP"], d["KP"]

    # Time-major bars; pad batch to a full 8-row sublane tile per step and append the
    # bias/ones column.  Pad value 1.0: the extra all-ones feature columns hit zero
    # slab rows; padded batch rows are discarded via h[0:batch] inside the kernel.
    BP = _round_up(B, 8)
    bars_t = jnp.swapaxes(bars, 0, 1)                               # (T, B, bar)
    bars_aug = jnp.pad(bars_t, ((0, 0), (0, BP - B), (0, KP - bar_size)),
                       constant_values=1.0)                         # (T, BP, KP)
    bars_flat = bars_aug.reshape(T * BP, KP)

    # Channel-major flatten so each channel's rows are contiguous inside the kernel.
    instr_flat = jnp.swapaxes(instruments_features, 0, 1).reshape(NC * B, instrument_size)
    bpm2 = bpm.reshape(B, 1)

    args = (bars_flat, instr_flat, mode, bpm2, params["lstm_w"], params["misc_w"])

    # Gridless single invocation: all (tiny) operands live untiled in VMEM -> no
    # redundant double-buffering / pipeline bookkeeping; 6 input DMAs total.
    vmem = pl.BlockSpec(memory_space=pltpu.MemorySpace.VMEM)
    out_p = pl.pallas_call(
        partial(_style_encoder_kernel, n_steps=T, batch=B, n_channels=NC, dims=d),
        out_shape=jax.ShapeDtypeStruct((B, SP), jnp.float32),
        in_specs=[vmem] * len(args),
        out_specs=vmem,
        compiler_params=pltpu.CompilerParams(
            # Footprint is <1 MiB; 32 MiB scoped VMEM is comfortable on v5e/v6e
            # (128 MiB physical) and is already the scoped ceiling on v7x (64 MiB
            # physical) -- re-derive tile/footprint math if B or T ever scale up.
            vmem_limit_bytes=32 * 1024 * 1024),
    )(*args)
    return out_p[:, :style_size]                                    # drop lane padding


# ------------------------- pure-JAX reference (check) --------------------------

@jax.jit
def reference_forward(lp, bars, instruments_features, mode, bpm):
    H = lp["w_hh"].shape[1]
    B, T, _ = bars.shape
    NC = instruments_features.shape[1]
    lrelu = lambda v: jnp.where(v >= 0, v, LEAKY_SLOPE * v)

    h = jnp.zeros((B, H), jnp.float32)
    c = jnp.zeros((B, H), jnp.float32)
    for t in range(T):
        g = bars[:, t] @ lp["w_ih"].T + h @ lp["w_hh"].T + lp["b_ih"] + lp["b_hh"]
        i = jax.nn.sigmoid(g[:, 0:H])
        f = jax.nn.sigmoid(g[:, H:2 * H])
        gg = jnp.tanh(g[:, 2 * H:3 * H])
        o = jax.nn.sigmoid(g[:, 3 * H:4 * H])
        c = f * c + i * gg
        h = o * jnp.tanh(c)

    x1 = h[:, None, :]
    x2 = lrelu(instruments_features @ lp["w_instr"].T + lp["b_instr"])
    x3 = lrelu(mode @ lp["w_mode"].T + lp["b_mode"])[:, None, :]
    x4 = lrelu(bpm[:, None] @ lp["w_bpm"].T + lp["b_bpm"])[:, None, :]
    xcat = jnp.concatenate([jnp.broadcast_to(x1, (B, NC, x1.shape[-1])), x2,
                            jnp.broadcast_to(x3, (B, NC, x3.shape[-1])),
                            jnp.broadcast_to(x4, (B, NC, x4.shape[-1]))], axis=-1)
    y = lrelu(xcat @ lp["w_lin"].T + lp["b_lin"])                   # (B, NC, style)
    sq = jnp.sum(y * y, axis=(0, 2), keepdims=True)                 # (1, NC, 1)
    norm = jnp.sqrt(1.0 + sq)
    return jnp.sum(y * norm, axis=1) / jnp.sum(norm)                # (B, style)


# ------------------------------------ main -------------------------------------

if __name__ == "__main__":
    style_size, bar_size, instrument_size = 32, 16, 8
    B, T, NC = 2, 8, 4

    key = jax.random.PRNGKey(0)
    kp, kb, ki, km, kf = jax.random.split(key, 5)
    logical = init_logical_params(kp, style_size, bar_size, instrument_size)
    packed = pack_params(logical)

    bars = jax.random.normal(kb, (B, T, bar_size), jnp.float32)
    instruments_features = jax.random.normal(ki, (B, NC, instrument_size), jnp.float32)
    mode = jax.random.normal(km, (B, N_MODES), jnp.float32)
    bpm = jax.random.uniform(kf, (B,), jnp.float32, 0.5, 2.0)

    out = style_encoder_forward(packed, bars, instruments_features, mode, bpm,
                                style_size=style_size)
    jax.block_until_ready(out)
    assert out.shape == (B, style_size)

    ref = reference_forward(logical, bars, instruments_features, mode, bpm)
    jax.block_until_ready(ref)
    np.testing.assert_allclose(np.asarray(out), np.asarray(ref), rtol=2e-2, atol=2e-2)

    print("KERNEL_OK")
</pallas_src>

<mosaic_0001>
module attributes {stable_mosaic.version = 11 : i64} {
  func.func @_style_encoder_kernel(%arg0: memref<64x32xf32, #tpu.memory_space<vmem>>, %arg1: memref<8x8xf32, #tpu.memory_space<vmem>>, %arg2: memref<2x2xf32, #tpu.memory_space<vmem>>, %arg3: memref<2x1xf32, #tpu.memory_space<vmem>>, %arg4: memref<160x512xbf16, #tpu.memory_space<vmem>>, %arg5: memref<568x128xf32, #tpu.memory_space<vmem>>, %arg6: memref<2x128xf32, #tpu.memory_space<vmem>>) attributes {dimension_semantics = [], scalar_prefetch = 0 : i64, scratch_operands = 0 : i64, tpu.core_type = #tpu.core_type<tc>} {
    %c0 = arith.constant 0 : index
    %c0_0 = arith.constant 0 : index
    %0 = vector.load %arg4[%c0, %c0_0] : memref<160x512xbf16, #tpu.memory_space<vmem>>, vector<32x512xbf16>
    %c32 = arith.constant 32 : index
    %c0_1 = arith.constant 0 : index
    %1 = vector.load %arg4[%c32, %c0_1] : memref<160x512xbf16, #tpu.memory_space<vmem>>, vector<128x512xbf16>
    %c0_2 = arith.constant 0 : index
    %c0_3 = arith.constant 0 : index
    %2 = vector.load %arg0[%c0_2, %c0_3] : memref<64x32xf32, #tpu.memory_space<vmem>>, vector<64x32xf32>
    %3 = arith.truncf %2 : vector<64x32xf32> to vector<64x32xbf16>
    %cst = arith.constant dense<0.000000e+00> : vector<64x512xf32>
    %4 = tpu.matmul %3, %0, %cst {dimension_numbers = #tpu.dot_dimension_numbers<[1], [0], [0], [1], [0, 0, 1, 1], [], []>} : vector<64x32xbf16>, vector<32x512xbf16>, vector<64x512xf32> -> vector<64x512xf32>
    %cst_4 = arith.constant 0.000000e+00 : f32
    %5 = vector.broadcast %cst_4 : f32 to vector<8x128xf32>
    %cst_5 = arith.constant 0.000000e+00 : f32
    %6 = vector.broadcast %cst_5 : f32 to vector<8x128xf32>
    %7 = vector.extract_strided_slice %4 {offsets = [0, 0], sizes = [8, 512], strides = [1, 1]} : vector<64x512xf32> to vector<8x512xf32>
    %8 = arith.truncf %5 : vector<8x128xf32> to vector<8x128xbf16>
    %cst_6 = arith.constant dense<0.000000e+00> : vector<8x512xf32>
    %9 = tpu.matmul %8, %1, %cst_6 {dimension_numbers = #tpu.dot_dimension_numbers<[1], [0], [0], [1], [0, 0, 1, 1], [], []>} : vector<8x128xbf16>, vector<128x512xbf16>, vector<8x512xf32> -> vector<8x512xf32>
    %10 = arith.addf %7, %9 : vector<8x512xf32>
    %11 = vector.extract_strided_slice %10 {offsets = [0, 0], sizes = [8, 128], strides = [1, 1]} : vector<8x512xf32> to vector<8x128xf32>
    %12 = arith.negf %11 : vector<8x128xf32>
    %13 = math.exp %12 : vector<8x128xf32>
    %cst_7 = arith.constant 1.000000e+00 : f32
    %14 = vector.broadcast %cst_7 : f32 to vector<8x128xf32>
    %15 = arith.addf %14, %13 : vector<8x128xf32>
    %16 = arith.divf %14, %15 : vector<8x128xf32>
    %17 = vector.extract_strided_slice %10 {offsets = [0, 128], sizes = [8, 128], strides = [1, 1]} : vector<8x512xf32> to vector<8x128xf32>
    %18 = arith.negf %17 : vector<8x128xf32>
    %19 = math.exp %18 : vector<8x128xf32>
    %cst_8 = arith.constant 1.000000e+00 : f32
    %20 = vector.broadcast %cst_8 : f32 to vector<8x128xf32>
    %21 = arith.addf %20, %19 : vector<8x128xf32>
    %22 = arith.divf %20, %21 : vector<8x128xf32>
    %23 = vector.extract_strided_slice %10 {offsets = [0, 256], sizes = [8, 128], strides = [1, 1]} : vector<8x512xf32> to vector<8x128xf32>
    %24 = math.tanh %23 : vector<8x128xf32>
    %25 = vector.extract_strided_slice %10 {offsets = [0, 384], sizes = [8, 128], strides = [1, 1]} : vector<8x512xf32> to vector<8x128xf32>
    %26 = arith.negf %25 : vector<8x128xf32>
    %27 = math.exp %26 : vector<8x128xf32>
    %cst_9 = arith.constant 1.000000e+00 : f32
    %28 = vector.broadcast %cst_9 : f32 to vector<8x128xf32>
    %29 = arith.addf %28, %27 : vector<8x128xf32>
    %30 = arith.divf %28, %29 : vector<8x128xf32>
    %31 = arith.mulf %22, %6 : vector<8x128xf32>
    %32 = arith.mulf %16, %24 : vector<8x128xf32>
    %33 = arith.addf %31, %32 : vector<8x128xf32>
    %34 = math.tanh %33 : vector<8x128xf32>
    %35 = arith.mulf %30, %34 : vector<8x128xf32>
    %36 = vector.extract_strided_slice %4 {offsets = [8, 0], sizes = [8, 512], strides = [1, 1]} : vector<64x512xf32> to vector<8x512xf32>
    %37 = arith.truncf %35 : vector<8x128xf32> to vector<8x128xbf16>
    %cst_10 = arith.constant dense<0.000000e+00> : vector<8x512xf32>
    %38 = tpu.matmul %37, %1, %cst_10 {dimension_numbers = #tpu.dot_dimension_numbers<[1], [0], [0], [1], [0, 0, 1, 1], [], []>} : vector<8x128xbf16>, vector<128x512xbf16>, vector<8x512xf32> -> vector<8x512xf32>
    %39 = arith.addf %36, %38 : vector<8x512xf32>
    %40 = vector.extract_strided_slice %39 {offsets = [0, 0], sizes = [8, 128], strides = [1, 1]} : vector<8x512xf32> to vector<8x128xf32>
    %41 = arith.negf %40 : vector<8x128xf32>
    %42 = math.exp %41 : vector<8x128xf32>
    %cst_11 = arith.constant 1.000000e+00 : f32
    %43 = vector.broadcast %cst_11 : f32 to vector<8x128xf32>
    %44 = arith.addf %43, %42 : vector<8x128xf32>
    %45 = arith.divf %43, %44 : vector<8x128xf32>
    %46 = vector.extract_strided_slice %39 {offsets = [0, 128], sizes = [8, 128], strides = [1, 1]} : vector<8x512xf32> to vector<8x128xf32>
    %47 = arith.negf %46 : vector<8x128xf32>
    %48 = math.exp %47 : vector<8x128xf32>
    %cst_12 = arith.constant 1.000000e+00 : f32
    %49 = vector.broadcast %cst_12 : f32 to vector<8x128xf32>
    %50 = arith.addf %49, %48 : vector<8x128xf32>
    %51 = arith.divf %49, %50 : vector<8x128xf32>
    %52 = vector.extract_strided_slice %39 {offsets = [0, 256], sizes = [8, 128], strides = [1, 1]} : vector<8x512xf32> to vector<8x128xf32>
    %53 = math.tanh %52 : vector<8x128xf32>
    %54 = vector.extract_strided_slice %39 {offsets = [0, 384], sizes = [8, 128], strides = [1, 1]} : vector<8x512xf32> to vector<8x128xf32>
    %55 = arith.negf %54 : vector<8x128xf32>
    %56 = math.exp %55 : vector<8x128xf32>
    %cst_13 = arith.constant 1.000000e+00 : f32
    %57 = vector.broadcast %cst_13 : f32 to vector<8x128xf32>
    %58 = arith.addf %57, %56 : vector<8x128xf32>
    %59 = arith.divf %57, %58 : vector<8x128xf32>
    %60 = arith.mulf %51, %33 : vector<8x128xf32>
    %61 = arith.mulf %45, %53 : vector<8x128xf32>
    %62 = arith.addf %60, %61 : vector<8x128xf32>
    %63 = math.tanh %62 : vector<8x128xf32>
    %64 = arith.mulf %59, %63 : vector<8x128xf32>
    %65 = vector.extract_strided_slice %4 {offsets = [16, 0], sizes = [8, 512], strides = [1, 1]} : vector<64x512xf32> to vector<8x512xf32>
    %66 = arith.truncf %64 : vector<8x128xf32> to vector<8x128xbf16>
    %cst_14 = arith.constant dense<0.000000e+00> : vector<8x512xf32>
    %67 = tpu.matmul %66, %1, %cst_14 {dimension_numbers = #tpu.dot_dimension_numbers<[1], [0], [0], [1], [0, 0, 1, 1], [], []>} : vector<8x128xbf16>, vector<128x512xbf16>, vector<8x512xf32> -> vector<8x512xf32>
    %68 = arith.addf %65, %67 : vector<8x512xf32>
    %69 = vector.extract_strided_slice %68 {offsets = [0, 0], sizes = [8, 128], strides = [1, 1]} : vector<8x512xf32> to vector<8x128xf32>
    %70 = arith.negf %69 : vector<8x128xf32>
    %71 = math.exp %70 : vector<8x128xf32>
    %cst_15 = arith.constant 1.000000e+00 : f32
    %72 = vector.broadcast %cst_15 : f32 to vector<8x128xf32>
    %73 = arith.addf %72, %71 : vector<8x128xf32>
    %74 = arith.divf %72, %73 : vector<8x128xf32>
    %75 = vector.extract_strided_slice %68 {offsets = [0, 128], sizes = [8, 128], strides = [1, 1]} : vector<8x512xf32> to vector<8x128xf32>
    %76 = arith.negf %75 : vector<8x128xf32>
    %77 = math.exp %76 : vector<8x128xf32>
    %cst_16 = arith.constant 1.000000e+00 : f32
    %78 = vector.broadcast %cst_16 : f32 to vector<8x128xf32>
    %79 = arith.addf %78, %77 : vector<8x128xf32>
    %80 = arith.divf %78, %79 : vector<8x128xf32>
    %81 = vector.extract_strided_slice %68 {offsets = [0, 256], sizes = [8, 128], strides = [1, 1]} : vector<8x512xf32> to vector<8x128xf32>
    %82 = math.tanh %81 : vector<8x128xf32>
    %83 = vector.extract_strided_slice %68 {offsets = [0, 384], sizes = [8, 128], strides = [1, 1]} : vector<8x512xf32> to vector<8x128xf32>
    %84 = arith.negf %83 : vector<8x128xf32>
    %85 = math.exp %84 : vector<8x128xf32>
    %cst_17 = arith.constant 1.000000e+00 : f32
    %86 = vector.broadcast %cst_17 : f32 to vector<8x128xf32>
    %87 = arith.addf %86, %85 : vector<8x128xf32>
    %88 = arith.divf %86, %87 : vector<8x128xf32>
    %89 = arith.mulf %80, %62 : vector<8x128xf32>
    %90 = arith.mulf %74, %82 : vector<8x128xf32>
    %91 = arith.addf %89, %90 : vector<8x128xf32>
    %92 = math.tanh %91 : vector<8x128xf32>
    %93 = arith.mulf %88, %92 : vector<8x128xf32>
    %94 = vector.extract_strided_slice %4 {offsets = [24, 0], sizes = [8, 512], strides = [1, 1]} : vector<64x512xf32> to vector<8x512xf32>
    %95 = arith.truncf %93 : vector<8x128xf32> to vector<8x128xbf16>
    %cst_18 = arith.constant dense<0.000000e+00> : vector<8x512xf32>
    %96 = tpu.matmul %95, %1, %cst_18 {dimension_numbers = #tpu.dot_dimension_numbers<[1], [0], [0], [1], [0, 0, 1, 1], [], []>} : vector<8x128xbf16>, vector<128x512xbf16>, vector<8x512xf32> -> vector<8x512xf32>
    %97 = arith.addf %94, %96 : vector<8x512xf32>
    %98 = vector.extract_strided_slice %97 {offsets = [0, 0], sizes = [8, 128], strides = [1, 1]} : vector<8x512xf32> to vector<8x128xf32>
    %99 = arith.negf %98 : vector<8x128xf32>
    %100 = math.exp %99 : vector<8x128xf32>
    %cst_19 = arith.constant 1.000000e+00 : f32
    %101 = vector.broadcast %cst_19 : f32 to vector<8x128xf32>
    %102 = arith.addf %101, %100 : vector<8x128xf32>
    %103 = arith.divf %101, %102 : vector<8x128xf32>
    %104 = vector.extract_strided_slice %97 {offsets = [0, 128], sizes = [8, 128], strides = [1, 1]} : vector<8x512xf32> to vector<8x128xf32>
    %105 = arith.negf %104 : vector<8x128xf32>
    %106 = math.exp %105 : vector<8x128xf32>
    %cst_20 = arith.constant 1.000000e+00 : f32
    %107 = vector.broadcast %cst_20 : f32 to vector<8x128xf32>
    %108 = arith.addf %107, %106 : vector<8x128xf32>
    %109 = arith.divf %107, %108 : vector<8x128xf32>
    %110 = vector.extract_strided_slice %97 {offsets = [0, 256], sizes = [8, 128], strides = [1, 1]} : vector<8x512xf32> to vector<8x128xf32>
    %111 = math.tanh %110 : vector<8x128xf32>
    %112 = vector.extract_strided_slice %97 {offsets = [0, 384], sizes = [8, 128], strides = [1, 1]} : vector<8x512xf32> to vector<8x128xf32>
    %113 = arith.negf %112 : vector<8x128xf32>
    %114 = math.exp %113 : vector<8x128xf32>
    %cst_21 = arith.constant 1.000000e+00 : f32
    %115 = vector.broadcast %cst_21 : f32 to vector<8x128xf32>
    %116 = arith.addf %115, %114 : vector<8x128xf32>
    %117 = arith.divf %115, %116 : vector<8x128xf32>
    %118 = arith.mulf %109, %91 : vector<8x128xf32>
    %119 = arith.mulf %103, %111 : vector<8x128xf32>
    %120 = arith.addf %118, %119 : vector<8x128xf32>
    %121 = math.tanh %120 : vector<8x128xf32>
    %122 = arith.mulf %117, %121 : vector<8x128xf32>
    %123 = vector.extract_strided_slice %4 {offsets = [32, 0], sizes = [8, 512], strides = [1, 1]} : vector<64x512xf32> to vector<8x512xf32>
    %124 = arith.truncf %122 : vector<8x128xf32> to vector<8x128xbf16>
    %cst_22 = arith.constant dense<0.000000e+00> : vector<8x512xf32>
    %125 = tpu.matmul %124, %1, %cst_22 {dimension_numbers = #tpu.dot_dimension_numbers<[1], [0], [0], [1], [0, 0, 1, 1], [], []>} : vector<8x128xbf16>, vector<128x512xbf16>, vector<8x512xf32> -> vector<8x512xf32>
    %126 = arith.addf %123, %125 : vector<8x512xf32>
    %127 = vector.extract_strided_slice %126 {offsets = [0, 0], sizes = [8, 128], strides = [1, 1]} : vector<8x512xf32> to vector<8x128xf32>
    %128 = arith.negf %127 : vector<8x128xf32>
    %129 = math.exp %128 : vector<8x128xf32>
    %cst_23 = arith.constant 1.000000e+00 : f32
    %130 = vector.broadcast %cst_23 : f32 to vector<8x128xf32>
    %131 = arith.addf %130, %129 : vector<8x128xf32>
    %132 = arith.divf %130, %131 : vector<8x128xf32>
    %133 = vector.extract_strided_slice %126 {offsets = [0, 128], sizes = [8, 128], strides = [1, 1]} : vector<8x512xf32> to vector<8x128xf32>
    %134 = arith.negf %133 : vector<8x128xf32>
    %135 = math.exp %134 : vector<8x128xf32>
    %cst_24 = arith.constant 1.000000e+00 : f32
    %136 = vector.broadcast %cst_24 : f32 to vector<8x128xf32>
    %137 = arith.addf %136, %135 : vector<8x128xf32>
    %138 = arith.divf %136, %137 : vector<8x128xf32>
    %139 = vector.extract_strided_slice %126 {offsets = [0, 256], sizes = [8, 128], strides = [1, 1]} : vector<8x512xf32> to vector<8x128xf32>
    %140 = math.tanh %139 : vector<8x128xf32>
    %141 = vector.extract_strided_slice %126 {offsets = [0, 384], sizes = [8, 128], strides = [1, 1]} : vector<8x512xf32> to vector<8x128xf32>
    %142 = arith.negf %141 : vector<8x128xf32>
    %143 = math.exp %142 : vector<8x128xf32>
    %cst_25 = arith.constant 1.000000e+00 : f32
    %144 = vector.broadcast %cst_25 : f32 to vector<8x128xf32>
    %145 = arith.addf %144, %143 : vector<8x128xf32>
    %146 = arith.divf %144, %145 : vector<8x128xf32>
    %147 = arith.mulf %138, %120 : vector<8x128xf32>
    %148 = arith.mulf %132, %140 : vector<8x128xf32>
    %149 = arith.addf %147, %148 : vector<8x128xf32>
    %150 = math.tanh %149 : vector<8x128xf32>
    %151 = arith.mulf %146, %150 : vector<8x128xf32>
    %152 = vector.extract_strided_slice %4 {offsets = [40, 0], sizes = [8, 512], strides = [1, 1]} : vector<64x512xf32> to vector<8x512xf32>
    %153 = arith.truncf %151 : vector<8x128xf32> to vector<8x128xbf16>
    %cst_26 = arith.constant dense<0.000000e+00> : vector<8x512xf32>
    %154 = tpu.matmul %153, %1, %cst_26 {dimension_numbers = #tpu.dot_dimension_numbers<[1], [0], [0], [1], [0, 0, 1, 1], [], []>} : vector<8x128xbf16>, vector<128x512xbf16>, vector<8x512xf32> -> vector<8x512xf32>
    %155 = arith.addf %152, %154 : vector<8x512xf32>
    %156 = vector.extract_strided_slice %155 {offsets = [0, 0], sizes = [8, 128], strides = [1, 1]} : vector<8x512xf32> to vector<8x128xf32>
    %157 = arith.negf %156 : vector<8x128xf32>
    %158 = math.exp %157 : vector<8x128xf32>
    %cst_27 = arith.constant 1.000000e+00 : f32
    %159 = vector.broadcast %cst_27 : f32 to vector<8x128xf32>
    %160 = arith.addf %159, %158 : vector<8x128xf32>
    %161 = arith.divf %159, %160 : vector<8x128xf32>
    %162 = vector.extract_strided_slice %155 {offsets = [0, 128], sizes = [8, 128], strides = [1, 1]} : vector<8x512xf32> to vector<8x128xf32>
    %163 = arith.negf %162 : vector<8x128xf32>
    %164 = math.exp %163 : vector<8x128xf32>
    %cst_28 = arith.constant 1.000000e+00 : f32
    %165 = vector.broadcast %cst_28 : f32 to vector<8x128xf32>
    %166 = arith.addf %165, %164 : vector<8x128xf32>
    %167 = arith.divf %165, %166 : vector<8x128xf32>
    %168 = vector.extract_strided_slice %155 {offsets = [0, 256], sizes = [8, 128], strides = [1, 1]} : vector<8x512xf32> to vector<8x128xf32>
    %169 = math.tanh %168 : vector<8x128xf32>
    %170 = vector.extract_strided_slice %155 {offsets = [0, 384], sizes = [8, 128], strides = [1, 1]} : vector<8x512xf32> to vector<8x128xf32>
    %171 = arith.negf %170 : vector<8x128xf32>
    %172 = math.exp %171 : vector<8x128xf32>
    %cst_29 = arith.constant 1.000000e+00 : f32
    %173 = vector.broadcast %cst_29 : f32 to vector<8x128xf32>
    %174 = arith.addf %173, %172 : vector<8x128xf32>
    %175 = arith.divf %173, %174 : vector<8x128xf32>
    %176 = arith.mulf %167, %149 : vector<8x128xf32>
    %177 = arith.mulf %161, %169 : vector<8x128xf32>
    %178 = arith.addf %176, %177 : vector<8x128xf32>
    %179 = math.tanh %178 : vector<8x128xf32>
    %180 = arith.mulf %175, %179 : vector<8x128xf32>
    %181 = vector.extract_strided_slice %4 {offsets = [48, 0], sizes = [8, 512], strides = [1, 1]} : vector<64x512xf32> to vector<8x512xf32>
    %182 = arith.truncf %180 : vector<8x128xf32> to vector<8x128xbf16>
    %cst_30 = arith.constant dense<0.000000e+00> : vector<8x512xf32>
    %183 = tpu.matmul %182, %1, %cst_30 {dimension_numbers = #tpu.dot_dimension_numbers<[1], [0], [0], [1], [0, 0, 1, 1], [], []>} : vector<8x128xbf16>, vector<128x512xbf16>, vector<8x512xf32> -> vector<8x512xf32>
    %184 = arith.addf %181, %183 : vector<8x512xf32>
    %185 = vector.extract_strided_slice %184 {offsets = [0, 0], sizes = [8, 128], strides = [1, 1]} : vector<8x512xf32> to vector<8x128xf32>
    %186 = arith.negf %185 : vector<8x128xf32>
    %187 = math.exp %186 : vector<8x128xf32>
    %cst_31 = arith.constant 1.000000e+00 : f32
    %188 = vector.broadcast %cst_31 : f32 to vector<8x128xf32>
    %189 = arith.addf %188, %187 : vector<8x128xf32>
    %190 = arith.divf %188, %189 : vector<8x128xf32>
    %191 = vector.extract_strided_slice %184 {offsets = [0, 128], sizes = [8, 128], strides = [1, 1]} : vector<8x512xf32> to vector<8x128xf32>
    %192 = arith.negf %191 : vector<8x128xf32>
    %193 = math.exp %192 : vector<8x128xf32>
    %cst_32 = arith.constant 1.000000e+00 : f32
    %194 = vector.broadcast %cst_32 : f32 to vector<8x128xf32>
    %195 = arith.addf %194, %193 : vector<8x128xf32>
    %196 = arith.divf %194, %195 : vector<8x128xf32>
    %197 = vector.extract_strided_slice %184 {offsets = [0, 256], sizes = [8, 128], strides = [1, 1]} : vector<8x512xf32> to vector<8x128xf32>
    %198 = math.tanh %197 : vector<8x128xf32>
    %199 = vector.extract_strided_slice %184 {offsets = [0, 384], sizes = [8, 128], strides = [1, 1]} : vector<8x512xf32> to vector<8x128xf32>
    %200 = arith.negf %199 : vector<8x128xf32>
    %201 = math.exp %200 : vector<8x128xf32>
    %cst_33 = arith.constant 1.000000e+00 : f32
    %202 = vector.broadcast %cst_33 : f32 to vector<8x128xf32>
    %203 = arith.addf %202, %201 : vector<8x128xf32>
    %204 = arith.divf %202, %203 : vector<8x128xf32>
    %205 = arith.mulf %196, %178 : vector<8x128xf32>
    %206 = arith.mulf %190, %198 : vector<8x128xf32>
    %207 = arith.addf %205, %206 : vector<8x128xf32>
    %208 = math.tanh %207 : vector<8x128xf32>
    %209 = arith.mulf %204, %208 : vector<8x128xf32>
    %210 = vector.extract_strided_slice %4 {offsets = [56, 0], sizes = [8, 512], strides = [1, 1]} : vector<64x512xf32> to vector<8x512xf32>
    %211 = arith.truncf %209 : vector<8x128xf32> to vector<8x128xbf16>
    %cst_34 = arith.constant dense<0.000000e+00> : vector<8x512xf32>
    %212 = tpu.matmul %211, %1, %cst_34 {dimension_numbers = #tpu.dot_dimension_numbers<[1], [0], [0], [1], [0, 0, 1, 1], [], []>} : vector<8x128xbf16>, vector<128x512xbf16>, vector<8x512xf32> -> vector<8x512xf32>
    %213 = arith.addf %210, %212 : vector<8x512xf32>
    %214 = vector.extract_strided_slice %213 {offsets = [0, 0], sizes = [8, 128], strides = [1, 1]} : vector<8x512xf32> to vector<8x128xf32>
    %215 = arith.negf %214 : vector<8x128xf32>
    %216 = math.exp %215 : vector<8x128xf32>
    %cst_35 = arith.constant 1.000000e+00 : f32
    %217 = vector.broadcast %cst_35 : f32 to vector<8x128xf32>
    %218 = arith.addf %217, %216 : vector<8x128xf32>
    %219 = arith.divf %217, %218 : vector<8x128xf32>
    %220 = vector.extract_strided_slice %213 {offsets = [0, 128], sizes = [8, 128], strides = [1, 1]} : vector<8x512xf32> to vector<8x128xf32>
    %221 = arith.negf %220 : vector<8x128xf32>
    %222 = math.exp %221 : vector<8x128xf32>
    %cst_36 = arith.constant 1.000000e+00 : f32
    %223 = vector.broadcast %cst_36 : f32 to vector<8x128xf32>
    %224 = arith.addf %223, %222 : vector<8x128xf32>
    %225 = arith.divf %223, %224 : vector<8x128xf32>
    %226 = vector.extract_strided_slice %213 {offsets = [0, 256], sizes = [8, 128], strides = [1, 1]} : vector<8x512xf32> to vector<8x128xf32>
    %227 = math.tanh %226 : vector<8x128xf32>
    %228 = vector.extract_strided_slice %213 {offsets = [0, 384], sizes = [8, 128], strides = [1, 1]} : vector<8x512xf32> to vector<8x128xf32>
    %229 = arith.negf %228 : vector<8x128xf32>
    %230 = math.exp %229 : vector<8x128xf32>
    %cst_37 = arith.constant 1.000000e+00 : f32
    %231 = vector.broadcast %cst_37 : f32 to vector<8x128xf32>
    %232 = arith.addf %231, %230 : vector<8x128xf32>
    %233 = arith.divf %231, %232 : vector<8x128xf32>
    %234 = arith.mulf %225, %207 : vector<8x128xf32>
    %235 = arith.mulf %219, %227 : vector<8x128xf32>
    %236 = arith.addf %234, %235 : vector<8x128xf32>
    %237 = math.tanh %236 : vector<8x128xf32>
    %238 = arith.mulf %233, %237 : vector<8x128xf32>
    %239 = vector.extract_strided_slice %238 {offsets = [0, 0], sizes = [2, 128], strides = [1, 1]} : vector<8x128xf32> to vector<2x128xf32>
    %c0_38 = arith.constant 0 : index
    %c0_39 = arith.constant 0 : index
    %240 = vector.load %arg1[%c0_38, %c0_39] : memref<8x8xf32, #tpu.memory_space<vmem>>, vector<8x8xf32>
    %c0_40 = arith.constant 0 : index
    %c0_41 = arith.constant 0 : index
    %241 = vector.load %arg5[%c0_40, %c0_41] : memref<568x128xf32, #tpu.memory_space<vmem>>, vector<8x128xf32>
    %cst_42 = arith.constant dense<0.000000e+00> : vector<8x128xf32>
    %242 = tpu.matmul %240, %241, %cst_42 {dimension_numbers = #tpu.dot_dimension_numbers<[1], [0], [0], [1], [0, 0, 1, 1], [], []>} : vector<8x8xf32>, vector<8x128xf32>, vector<8x128xf32> -> vector<8x128xf32>
    %c8 = arith.constant 8 : index
    %c0_43 = arith.constant 0 : index
    %243 = vector.load %arg5[%c8, %c0_43] : memref<568x128xf32, #tpu.memory_space<vmem>>, vector<1x128xf32>
    %244 = vector.broadcast %243 : vector<1x128xf32> to vector<8x128xf32>
    %245 = arith.addf %242, %244 : vector<8x128xf32>
    %cst_44 = arith.constant 0.00999999977 : f32
    %246 = vector.broadcast %cst_44 : f32 to vector<8x128xf32>
    %247 = arith.mulf %246, %245 : vector<8x128xf32>
    %248 = arith.maximumf %245, %247 : vector<8x128xf32>
    %c0_45 = arith.constant 0 : index
    %c0_46 = arith.constant 0 : index
    %249 = vector.load %arg2[%c0_45, %c0_46] : memref<2x2xf32, #tpu.memory_space<vmem>>, vector<2x2xf32>
    %c16 = arith.constant 16 : index
    %c0_47 = arith.constant 0 : index
    %250 = vector.load %arg5[%c16, %c0_47] : memref<568x128xf32, #tpu.memory_space<vmem>>, vector<2x128xf32>
    %cst_48 = arith.constant dense<0.000000e+00> : vector<2x128xf32>
    %251 = tpu.matmul %249, %250, %cst_48 {dimension_numbers = #tpu.dot_dimension_numbers<[1], [0], [0], [1], [0, 0, 1, 1], [], []>} : vector<2x2xf32>, vector<2x128xf32>, vector<2x128xf32> -> vector<2x128xf32>
    %c24 = arith.constant 24 : index
    %c0_49 = arith.constant 0 : index
    %252 = vector.load %arg5[%c24, %c0_49] : memref<568x128xf32, #tpu.memory_space<vmem>>, vector<1x128xf32>
    %253 = vector.broadcast %252 : vector<1x128xf32> to vector<2x128xf32>
    %254 = arith.addf %251, %253 : vector<2x128xf32>
    %cst_50 = arith.constant 0.00999999977 : f32
    %255 = vector.broadcast %cst_50 : f32 to vector<2x128xf32>
    %256 = arith.mulf %255, %254 : vector<2x128xf32>
    %257 = arith.maximumf %254, %256 : vector<2x128xf32>
    %c0_51 = arith.constant 0 : index
    %c0_52 = arith.constant 0 : index
    %258 = vector.load %arg3[%c0_51, %c0_52] : memref<2x1xf32, #tpu.memory_space<vmem>>, vector<2x1xf32>
    %c32_53 = arith.constant 32 : index
    %c0_54 = arith.constant 0 : index
    %259 = vector.load %arg5[%c32_53, %c0_54] : memref<568x128xf32, #tpu.memory_space<vmem>>, vector<1x128xf32>
    %260 = vector.broadcast %258 : vector<2x1xf32> to vector<2x128xf32>
    %261 = vector.broadcast %259 : vector<1x128xf32> to vector<2x128xf32>
    %262 = arith.mulf %260, %261 : vector<2x128xf32>
    %c40 = arith.constant 40 : index
    %c0_55 = arith.constant 0 : index
    %263 = vector.load %arg5[%c40, %c0_55] : memref<568x128xf32, #tpu.memory_space<vmem>>, vector<1x128xf32>
    %264 = vector.broadcast %263 : vector<1x128xf32> to vector<2x128xf32>
    %265 = arith.addf %262, %264 : vector<2x128xf32>
    %cst_56 = arith.constant 0.00999999977 : f32
    %266 = vector.broadcast %cst_56 : f32 to vector<2x128xf32>
    %267 = arith.mulf %266, %265 : vector<2x128xf32>
    %268 = arith.maximumf %265, %267 : vector<2x128xf32>
    %c48 = arith.constant 48 : index
    %c0_57 = arith.constant 0 : index
    %269 = vector.load %arg5[%c48, %c0_57] : memref<568x128xf32, #tpu.memory_space<vmem>>, vector<128x128xf32>
    %cst_58 = arith.constant dense<0.000000e+00> : vector<2x128xf32>
    %270 = tpu.matmul %239, %269, %cst_58 {dimension_numbers = #tpu.dot_dimension_numbers<[1], [0], [0], [1], [0, 0, 1, 1], [], []>} : vector<2x128xf32>, vector<128x128xf32>, vector<2x128xf32> -> vector<2x128xf32>
    %c304 = arith.constant 304 : index
    %c0_59 = arith.constant 0 : index
    %271 = vector.load %arg5[%c304, %c0_59] : memref<568x128xf32, #tpu.memory_space<vmem>>, vector<128x128xf32>
    %cst_60 = arith.constant dense<0.000000e+00> : vector<2x128xf32>
    %272 = tpu.matmul %257, %271, %cst_60 {dimension_numbers = #tpu.dot_dimension_numbers<[1], [0], [0], [1], [0, 0, 1, 1], [], []>} : vector<2x128xf32>, vector<128x128xf32>, vector<2x128xf32> -> vector<2x128xf32>
    %273 = arith.addf %270, %272 : vector<2x128xf32>
    %c432 = arith.constant 432 : index
    %c0_61 = arith.constant 0 : index
    %274 = vector.load %arg5[%c432, %c0_61] : memref<568x128xf32, #tpu.memory_space<vmem>>, vector<128x128xf32>
    %cst_62 = arith.constant dense<0.000000e+00> : vector<2x128xf32>
    %275 = tpu.matmul %268, %274, %cst_62 {dimension_numbers = #tpu.dot_dimension_numbers<[1], [0], [0], [1], [0, 0, 1, 1], [], []>} : vector<2x128xf32>, vector<128x128xf32>, vector<2x128xf32> -> vector<2x128xf32>
    %276 = arith.addf %273, %275 : vector<2x128xf32>
    %c560 = arith.constant 560 : index
    %c0_63 = arith.constant 0 : index
    %277 = vector.load %arg5[%c560, %c0_63] : memref<568x128xf32, #tpu.memory_space<vmem>>, vector<1x128xf32>
    %278 = vector.broadcast %277 : vector<1x128xf32> to vector<2x128xf32>
    %279 = arith.addf %276, %278 : vector<2x128xf32>
    %c176 = arith.constant 176 : index
    %c0_64 = arith.constant 0 : index
    %280 = vector.load %arg5[%c176, %c0_64] : memref<568x128xf32, #tpu.memory_space<vmem>>, vector<128x128xf32>
    %cst_65 = arith.constant dense<0.000000e+00> : vector<8x128xf32>
    %281 = tpu.matmul %248, %280, %cst_65 {dimension_numbers = #tpu.dot_dimension_numbers<[1], [0], [0], [1], [0, 0, 1, 1], [], []>} : vector<8x128xf32>, vector<128x128xf32>, vector<8x128xf32> -> vector<8x128xf32>
    %282 = tpu.iota {dimensions = array<i32: 0>} : vector<8x2xi32>
    %c2_i32 = arith.constant 2 : i32
    %c0_i32 = arith.constant 0 : i32
    %283 = arith.cmpi eq, %c2_i32, %c0_i32 : i32
    %c1_i32 = arith.constant 1 : i32
    %284 = arith.select %283, %c1_i32, %c2_i32 : i32
    %285 = vector.broadcast %284 : i32 to vector<8x2xi32>
    %286 = arith.remsi %282, %285 : vector<8x2xi32>
    %c0_i32_66 = arith.constant 0 : i32
    %287 = vector.broadcast %c0_i32_66 : i32 to vector<8x2xi32>
    %288 = arith.cmpi ne, %286, %287 : vector<8x2xi32>
    %c0_i32_67 = arith.constant 0 : i32
    %289 = vector.broadcast %c0_i32_67 : i32 to vector<8x2xi32>
    %290 = arith.cmpi slt, %286, %289 : vector<8x2xi32>
    %c0_i32_68 = arith.constant 0 : i32
    %291 = arith.cmpi slt, %284, %c0_i32_68 : i32
    %292 = vector.broadcast %291 : i1 to vector<8x2xi1>
    %293 = vector.broadcast %292 : vector<8x2xi1> to vector<8x2xi1>
    %294 = arith.xori %290, %293 : vector<8x2xi1>
    %295 = arith.andi %294, %288 : vector<8x2xi1>
    %296 = vector.broadcast %284 : i32 to vector<8x2xi32>
    %297 = arith.addi %286, %296 : vector<8x2xi32>
    %298 = arith.select %295, %297, %286 : vector<8x2xi1>, vector<8x2xi32>
    %299 = tpu.iota {dimensions = array<i32: 1>} : vector<8x2xi32>
    %300 = arith.cmpi eq, %298, %299 : vector<8x2xi32>
    %301 = arith.extui %300 : vector<8x2xi1> to vector<8x2xi32>
    %302 = arith.sitofp %301 : vector<8x2xi32> to vector<8x2xf32>
    %cst_69 = arith.constant dense<0.000000e+00> : vector<8x128xf32>
    %303 = tpu.matmul %302, %279, %cst_69 {dimension_numbers = #tpu.dot_dimension_numbers<[1], [0], [0], [1], [0, 0, 1, 1], [], []>} : vector<8x2xf32>, vector<2x128xf32>, vector<8x128xf32> -> vector<8x128xf32>
    %304 = arith.addf %281, %303 : vector<8x128xf32>
    %cst_70 = arith.constant 0.00999999977 : f32
    %305 = vector.broadcast %cst_70 : f32 to vector<8x128xf32>
    %306 = arith.mulf %305, %304 : vector<8x128xf32>
    %307 = arith.maximumf %304, %306 : vector<8x128xf32>
    %308 = arith.mulf %307, %307 : vector<8x128xf32>
    %cst_71 = arith.constant dense<0.000000e+00> : vector<8xf32>
    %309 = vector.multi_reduction <add>, %308, %cst_71 [1] : vector<8x128xf32> to vector<8xf32>
    %310 = vector.shape_cast %309 : vector<8xf32> to vector<8x1xf32>
    %cst_72 = arith.constant 0.000000e+00 : f32
    %311 = vector.broadcast %cst_72 : f32 to vector<2x128xf32>
    %cst_73 = arith.constant 0.000000e+00 : f32
    %312 = vector.broadcast %cst_73 : f32 to vector<1x1xf32>
    %313 = vector.extract_strided_slice %310 {offsets = [0, 0], sizes = [2, 1], strides = [1, 1]} : vector<8x1xf32> to vector<2x1xf32>
    %314 = vector.shape_cast %313 : vector<2x1xf32> to vector<1x2x1xf32>
    %cst_74 = arith.constant dense<0.000000e+00> : vector<1xf32>
    %315 = vector.multi_reduction <add>, %314, %cst_74 [1, 2] : vector<1x2x1xf32> to vector<1xf32>
    %316 = vector.shape_cast %315 : vector<1xf32> to vector<1x1x1xf32>
    %317 = vector.extract %316[0, 0, 0] : f32 from vector<1x1x1xf32>
    %318 = vector.broadcast %317 : f32 to vector<1x1xf32>
    %cst_75 = arith.constant 1.000000e+00 : f32
    %319 = vector.broadcast %cst_75 : f32 to vector<1x1xf32>
    %320 = arith.addf %319, %318 : vector<1x1xf32>
    %321 = math.sqrt %320 : vector<1x1xf32>
    %322 = vector.extract_strided_slice %307 {offsets = [0, 0], sizes = [2, 128], strides = [1, 1]} : vector<8x128xf32> to vector<2x128xf32>
    %323 = vector.broadcast %321 : vector<1x1xf32> to vector<2x128xf32>
    %324 = arith.mulf %322, %323 : vector<2x128xf32>
    %325 = arith.addf %311, %324 : vector<2x128xf32>
    %326 = arith.addf %312, %321 : vector<1x1xf32>
    %327 = vector.extract_strided_slice %310 {offsets = [2, 0], sizes = [2, 1], strides = [1, 1]} : vector<8x1xf32> to vector<2x1xf32>
    %328 = vector.shape_cast %327 : vector<2x1xf32> to vector<1x2x1xf32>
    %cst_76 = arith.constant dense<0.000000e+00> : vector<1xf32>
    %329 = vector.multi_reduction <add>, %328, %cst_76 [1, 2] : vector<1x2x1xf32> to vector<1xf32>
    %330 = vector.shape_cast %329 : vector<1xf32> to vector<1x1x1xf32>
    %331 = vector.extract %330[0, 0, 0] : f32 from vector<1x1x1xf32>
    %332 = vector.broadcast %331 : f32 to vector<1x1xf32>
    %cst_77 = arith.constant 1.000000e+00 : f32
    %333 = vector.broadcast %cst_77 : f32 to vector<1x1xf32>
    %334 = arith.addf %333, %332 : vector<1x1xf32>
    %335 = math.sqrt %334 : vector<1x1xf32>
    %336 = vector.extract_strided_slice %307 {offsets = [2, 0], sizes = [2, 128], strides = [1, 1]} : vector<8x128xf32> to vector<2x128xf32>
    %337 = vector.broadcast %335 : vector<1x1xf32> to vector<2x128xf32>
    %338 = arith.mulf %336, %337 : vector<2x128xf32>
    %339 = arith.addf %325, %338 : vector<2x128xf32>
    %340 = arith.addf %326, %335 : vector<1x1xf32>
    %341 = vector.extract_strided_slice %310 {offsets = [4, 0], sizes = [2, 1], strides = [1, 1]} : vector<8x1xf32> to vector<2x1xf32>
    %342 = vector.shape_cast %341 : vector<2x1xf32> to vector<1x2x1xf32>
    %cst_78 = arith.constant dense<0.000000e+00> : vector<1xf32>
    %343 = vector.multi_reduction <add>, %342, %cst_78 [1, 2] : vector<1x2x1xf32> to vector<1xf32>
    %344 = vector.shape_cast %343 : vector<1xf32> to vector<1x1x1xf32>
    %345 = vector.extract %344[0, 0, 0] : f32 from vector<1x1x1xf32>
    %346 = vector.broadcast %345 : f32 to vector<1x1xf32>
    %cst_79 = arith.constant 1.000000e+00 : f32
    %347 = vector.broadcast %cst_79 : f32 to vector<1x1xf32>
    %348 = arith.addf %347, %346 : vector<1x1xf32>
    %349 = math.sqrt %348 : vector<1x1xf32>
    %350 = vector.extract_strided_slice %307 {offsets = [4, 0], sizes = [2, 128], strides = [1, 1]} : vector<8x128xf32> to vector<2x128xf32>
    %351 = vector.broadcast %349 : vector<1x1xf32> to vector<2x128xf32>
    %352 = arith.mulf %350, %351 : vector<2x128xf32>
    %353 = arith.addf %339, %352 : vector<2x128xf32>
    %354 = arith.addf %340, %349 : vector<1x1xf32>
    %355 = vector.extract_strided_slice %310 {offsets = [6, 0], sizes = [2, 1], strides = [1, 1]} : vector<8x1xf32> to vector<2x1xf32>
    %356 = vector.shape_cast %355 : vector<2x1xf32> to vector<1x2x1xf32>
    %cst_80 = arith.constant dense<0.000000e+00> : vector<1xf32>
    %357 = vector.multi_reduction <add>, %356, %cst_80 [1, 2] : vector<1x2x1xf32> to vector<1xf32>
    %358 = vector.shape_cast %357 : vector<1xf32> to vector<1x1x1xf32>
    %359 = vector.extract %358[0, 0, 0] : f32 from vector<1x1x1xf32>
    %360 = vector.broadcast %359 : f32 to vector<1x1xf32>
    %cst_81 = arith.constant 1.000000e+00 : f32
    %361 = vector.broadcast %cst_81 : f32 to vector<1x1xf32>
    %362 = arith.addf %361, %360 : vector<1x1xf32>
    %363 = math.sqrt %362 : vector<1x1xf32>
    %364 = vector.extract_strided_slice %307 {offsets = [6, 0], sizes = [2, 128], strides = [1, 1]} : vector<8x128xf32> to vector<2x128xf32>
    %365 = vector.broadcast %363 : vector<1x1xf32> to vector<2x128xf32>
    %366 = arith.mulf %364, %365 : vector<2x128xf32>
    %367 = arith.addf %353, %366 : vector<2x128xf32>
    %368 = arith.addf %354, %363 : vector<1x1xf32>
    %369 = vector.broadcast %368 : vector<1x1xf32> to vector<2x128xf32>
    %370 = arith.divf %367, %369 : vector<2x128xf32>
    %c0_82 = arith.constant 0 : index
    %c0_83 = arith.constant 0 : index
    %371 = vector.load %arg6[%c0_82, %c0_83] : memref<2x128xf32, #tpu.memory_space<vmem>>, vector<2x128xf32>
    tpu.vector_store %arg6[%c0_82, %c0_83], %370 {strides = array<i32>} : memref<2x128xf32, #tpu.memory_space<vmem>>, vector<2x128xf32>,
    return
  }
}

</mosaic_0001>

<bundles_post_ra>
// kernel: style_encoder_forward.1
= control target key start
LH: loop header
LB: loop body
LE: loop exit
PB: predicated region body
PF: predicated region fallthrough
CT: control target
= control target key end

     0   :  { %11 = vsyncpa [#allocation3], 0  ;;  %s3484_s0 = inlined_call_operand.vmem [shape: f32[64,32], index: 0, kind: input, shape index: {}]   ;;  %s3485_s1 = inlined_call_operand.vmem [shape: f32[8,8], index: 1, kind: input, shape index: {}]   ;;  %s3486_s2 = inlined_call_operand.vmem [shape: f32[2,2], index: 2, kind: input, shape index: {}]   ;;  %s3487_s3 = inlined_call_operand.vmem [shape: f32[2,1], index: 3, kind: input, shape index: {}]   ;;  %s3488_s4 = inlined_call_operand.hbm [shape: bf16[160,512], index: 4, kind: input, shape index: {}]   ;;  %s3489_s5 = inlined_call_operand.hbm [shape: f32[568,128], index: 5, kind: input, shape index: {}]   ;;  %s3490_s6 = inlined_call_operand.hbm [shape: f32[2,128], index: 6, kind: output, shape index: {}]  }
   0x1   :  { %12 = vsyncpa [#allocation6], 0 }
   0x2   :  { %13 = vsyncpa [#allocation4], 0  ;;  %s2848_s21 = smov [#allocation2]   ;;  %s2776_s25 = scalar_lea.hbm %s3488_s4, 5120 }
   0x3   :  { %s27_s22 = sshll.u32 %s2848_s21, 4  ;;  %p2777_p0 = scmp.ne.s32.totalorder %s3488_s4, %s2776_s25  ;;  %s28_s22 = int_to_ptr.vmem [resolvable:$true] %s27_s22 }
   0x4   :  { %p2780_p1 = scmp.lt.u32.totalorder %s2776_s25, %s3488_s4 }
   0x6   :  { %p2782_p2 = pnand %p2780_p1, %p2777_p0 }
   0x8   :  { %2785 = shalt.err (!%p2782_p2)
}
   0x9   :  { %s2786_s30 = scalar_lea.vmem %s28_s22, 5120  ;;  %p2791_p4 = scmp.lt.s32.totalorder %s28_s22, %s28_s22 }
   0xa   :  { %p2787_p3 = scmp.ne.s32.totalorder %s28_s22, %s2786_s30  ;;  %p2792_p5 = scmp.lt.s32.totalorder %s2786_s30, %s2786_s30 }
   0xc   :  { %p2793_p6 = por %p2792_p5, %p2791_p4 }
   0xe   :  { %p2794_p7 = pnand %p2793_p6, %p2787_p3 }
  0x10   :  { %2797 = shalt.err (!%p2794_p7)
}
  0x11   :  { %s2849_s7 = smov 256   ;;  %s2850_s8 = smov 16  }
  0x12   :  { %33 = dma.hbm_to_vmem [thread:$0]  %s3488_s4, 5120, %s28_s22, [#allocation3], %s2849_s7, %s2849_s7, %s2850_s8  }
  0x13   :  { %s2851_s11 = smov [#allocation5]   ;;  %s2798_s15 = scalar_lea.hbm %s3489_s5, 9088 }
  0x14   :  { %s39_s12 = sshll.u32 %s2851_s11, 4  ;;  %p2799_p8 = scmp.ne.s32.totalorder %s3489_s5, %s2798_s15  ;;  %s40_s12 = int_to_ptr.vmem [resolvable:$true] %s39_s12 }
  0x15   :  { %p2802_p9 = scmp.lt.u32.totalorder %s2798_s15, %s3489_s5 }
  0x17   :  { %p2804_p10 = pnand %p2802_p9, %p2799_p8 }
  0x19   :  { %2807 = shalt.err (!%p2804_p10)
}
  0x1a   :  { %s2808_s20 = scalar_lea.vmem %s40_s12, 9088  ;;  %p2813_p12 = scmp.lt.s32.totalorder %s40_s12, %s40_s12 }
  0x1b   :  { %p2809_p11 = scmp.ne.s32.totalorder %s40_s12, %s2808_s20  ;;  %p2814_p13 = scmp.lt.s32.totalorder %s2808_s20, %s2808_s20 }
  0x1d   :  { %p2815_p0 = por %p2814_p13, %p2813_p12 }
  0x1f   :  { %p2816_p1 = pnand %p2815_p0, %p2809_p11 }
  0x21   :  { %2819 = shalt.err (!%p2816_p1)
}
  0x22   :  { %s2852_s4 = smov 128   ;;  %s2853_s21 = smov 8  }
  0x23   :  { %45 = dma.hbm_to_vmem [thread:$0]  %s3489_s5, 9088, %s40_s12, [#allocation6], %s2852_s4, %s2852_s4, %s2853_s21  }
  0x24   :  { %2842 = dma.done.wait [#allocation3], 5120  }
  0x25   :  { %2843 = vsyncadd [#allocation3], 4294962176 }
  0x26   :  { %2844 = dma.done.wait [#allocation6], 9088  }
  0x27   :  { %2845 = vsyncadd [#allocation6], 4294958208  ;;  %v3491_v0 = vmov 0   ;;  %v2546_v1 = vld [vmem:[#allocation2 + $0x4] ss:$16 sps:$4 sm:$0xff]   ;;  %v94_v10 = vld [vmem:[%s3484_s0 + $0x8] sm:$0xff] }
  0x28   :  { %190 = vmatprep.mubr.bf16.mxu0 %v3491_v0  ;;  %263 = vmatprep.mubr.bf16.mxu1 %v3491_v0  ;;  %v2548_v2 = vld [vmem:[#allocation2 + $0xc] ss:$16 sps:$4 sm:$0xff]   ;;  %v2550_v3 = vld [vmem:[#allocation2] ss:$16 sps:$4 sm:$0xff]   ;;  %v2551_v4 = vld [vmem:[#allocation2 + $0x8] ss:$16 sps:$4 sm:$0xff]  }
  0x29   :  { %2545 = vset.pattern.permute.xlu0 %v3491_v0  ;;  %158 = vmatprep.subr.bf16.mxu0 %v2546_v1  ;;  %v2552_v5 = vld [vmem:[#allocation2 + $0x24] ss:$16 sps:$4 sm:$0xff]   ;;  %v2554_v6 = vld [vmem:[#allocation2 + $0x2c] ss:$16 sps:$4 sm:$0xff]   ;;  %v2556_v7 = vld [vmem:[#allocation2 + $0x20] ss:$16 sps:$4 sm:$0xff]  }
  0x2a   :  { %231 = vmatprep.subr.bf16.mxu1 %v2548_v2  ;;  %159 = vmatpush1.bf16.msra.mxu0 %v2550_v3  ;;  %v2557_v8 = vld [vmem:[#allocation2 + $0x28] ss:$16 sps:$4 sm:$0xff]   ;;  %v93_v9 = vld [vmem:[%s3484_s0] sm:$0xff]  ;;  %v2929_v13 = vld [vmem:[#allocation2 + $0x4c] ss:$16 sps:$4 sm:$0xff]   ;;  %vm145_vm0 = vcmask 261120  }
  0x2b   :  { %232 = vmatpush1.bf16.msra.mxu1 %v2551_v4  ;;  %160 = vmatprep.subr.bf16.mxu0 %v2552_v5  ;;  %v2927_v11 = vld [vmem:[#allocation2 + $0x44] ss:$16 sps:$4 sm:$0xff]   ;;  %v101_v12 = vpack.c.bf16 %v94_v10, %v93_v9  ;;  %v2931_v14 = vld [vmem:[#allocation2 + $0x40] ss:$16 sps:$4 sm:$0xff]   ;;  %v2933_v15 = vld [vmem:[#allocation2 + $0x48] ss:$16 sps:$4 sm:$0xff]  }
  0x2c   :  { %233 = vmatprep.subr.bf16.mxu1 %v2554_v6  ;;  %v2937_v16 = vld [vmem:[#allocation2 + $0x64] ss:$16 sps:$4 sm:$0xff]   ;;  %v2939_v17 = vld [vmem:[#allocation2 + $0x6c] ss:$16 sps:$4 sm:$0xff]   ;;  %v2941_v18 = vld [vmem:[#allocation2 + $0x60] ss:$16 sps:$4 sm:$0xff]  }
  0x2d   :  { %v2945_v19 = vld [vmem:[#allocation2 + $0x68] ss:$16 sps:$4 sm:$0xff]   ;;  %v95_v20 = vld [vmem:[%s3484_s0 + $0x10] sm:$0xff]  ;;  %v2959_v23 = vld [vmem:[#allocation2 + $0x8c] ss:$16 sps:$4 sm:$0xff]   ;;  %vm1445_vm1 = vcmask 1041408  }
  0x2e   :  { %161 = vmatpush1.bf16.msra.mxu0 %v2556_v7  ;;  %v96_v21 = vld [vmem:[%s3484_s0 + $0x18] sm:$0xff]  ;;  %v2955_v22 = vld [vmem:[#allocation2 + $0x84] ss:$16 sps:$4 sm:$0xff]   ;;  %v2965_v25 = vld [vmem:[#allocation2 + $0x80] ss:$16 sps:$4 sm:$0xff]   ;;  %vm2856_vm2 = vmmov 0  }
  0x2f   :  { %234 = vmatpush1.bf16.msra.mxu1 %v2557_v8  ;;  %464 = vmatprep.subr.bf16.mxu0 %v2927_v11  ;;  %v102_v24 = vpack.c.bf16 %v96_v21, %v95_v20  ;;  %v2967_v26 = vld [vmem:[#allocation2 + $0x88] ss:$16 sps:$4 sm:$0xff]   ;;  %v2971_v27 = vld [vmem:[#allocation2 + $0xa4] ss:$16 sps:$4 sm:$0xff]   ;;  %v2973_v28 = vld [vmem:[#allocation2 + $0xac] ss:$16 sps:$4 sm:$0xff]  }
  0x30   :  { %505 = vmatprep.subr.bf16.mxu1 %v2929_v13  ;;  %v2975_v29 = vld [vmem:[#allocation2 + $0xa0] ss:$16 sps:$4 sm:$0xff]   ;;  %v2977_v30 = vld [vmem:[#allocation2 + $0xa8] ss:$16 sps:$4 sm:$0xff]   ;;  %v2989_v33 = vld [vmem:[#allocation2 + $0xc4] ss:$16 sps:$4 sm:$0xff]  }
  0x31   :  { %2124 = vmatmul.mubr.msk.bf16.vlgmr.msra.gmra.mrb[0].mxu0 %vm145_vm0, %v101_v12  ;;  %v97_v31 = vld [vmem:[%s3484_s0 + $0x20] sm:$0xff]  ;;  %v98_v32 = vld [vmem:[%s3484_s0 + $0x28] sm:$0xff]  ;;  %v99_v42 = vld [vmem:[%s3484_s0 + $0x30] sm:$0xff]  ;;  %vm1441_vm3 = vcmask 15360   ;;  %vm1358_vm4 = vcmask 64512   ;;  %vm1992_vm6 = vcmask 1024  }
  0x32   :  { %2128 = vmatmul.mubr.msk.bf16.vlgmr.msra.gmra.mrb[0].mxu1 %vm145_vm0, %v101_v12  ;;  %465 = vmatpush1.bf16.msra.mxu0 %v2931_v14  ;;  %v2993_v34 = vld [vmem:[#allocation2 + $0xcc] ss:$16 sps:$4 sm:$0xff]   ;;  %v103_v35 = vpack.c.bf16 %v98_v32, %v97_v31  ;;  %v2997_v36 = vld [vmem:[#allocation2 + $0xc0] ss:$16 sps:$4 sm:$0xff]   ;;  %v2999_v37 = vld [vmem:[#allocation2 + $0xc8] ss:$16 sps:$4 sm:$0xff]  }
  0x33   :  { %506 = vmatpush1.bf16.msra.mxu1 %v2933_v15  ;;  %466 = vmatprep.subr.bf16.mxu0 %v2937_v16  ;;  %v3003_v38 = vld [vmem:[#allocation2 + $0xe4] ss:$16 sps:$4 sm:$0xff]   ;;  %v3007_v39 = vld [vmem:[#allocation2 + $0xec] ss:$16 sps:$4 sm:$0xff]   ;;  %v3009_v40 = vld [vmem:[#allocation2 + $0xe0] ss:$16 sps:$4 sm:$0xff]  }
  0x34   :  { %507 = vmatprep.subr.bf16.mxu1 %v2939_v17  ;;  %200 = vmatprep.mubr.bf16.mxu0 %v3491_v0  ;;  %v3013_v41 = vld [vmem:[#allocation2 + $0xe8] ss:$16 sps:$4 sm:$0xff]   ;;  %v3025_v44 = vld [vmem:[#allocation2 + $0x104] ss:$16 sps:$4 sm:$0xff]   ;;  %v3027_v45 = vld [vmem:[#allocation2 + $0x10c] ss:$16 sps:$4 sm:$0xff]  }
  0x35   :  { %273 = vmatprep.mubr.bf16.mxu1 %v3491_v0  ;;  %v100_v43 = vld [vmem:[%s3484_s0 + $0x38] sm:$0xff]  ;;  %v3033_v47 = vld [vmem:[#allocation2 + $0x100] ss:$16 sps:$4 sm:$0xff]   ;;  %v3039_v49 = vld [vmem:[#allocation2 + $0x124] ss:$16 sps:$4 sm:$0xff]   ;;  %s2858_s4 = smov [#allocation7]  }
  0x36   :  { %467 = vmatpush1.bf16.msra.mxu0 %v2941_v18  ;;  %v104_v46 = vpack.c.bf16 %v100_v43, %v99_v42  ;;  %v3035_v48 = vld [vmem:[#allocation2 + $0x108] ss:$16 sps:$4 sm:$0xff]   ;;  %v3041_v50 = vld [vmem:[#allocation2 + $0x12c] ss:$16 sps:$4 sm:$0xff]   ;;  %v3047_v51 = vld [vmem:[#allocation2 + $0x120] ss:$16 sps:$4 sm:$0xff]  }
  0x37   :  { %508 = vmatpush1.bf16.msra.mxu1 %v2945_v19  ;;  %468 = vmatprep.subr.bf16.mxu0 %v2955_v22  ;;  %v3049_v52 = vld [vmem:[#allocation2 + $0x128] ss:$16 sps:$4 sm:$0xff]   ;;  %s2106_s21 = sshll.u32 %s2858_s4, 4  ;;  %s2107_s21 = int_to_ptr.vmem [resolvable:$true] %s2106_s21 }
  0x38   :  { %509 = vmatprep.subr.bf16.mxu1 %v2959_v23  ;;  %s2820_s22 = scalar_lea.vmem %s2107_s21, 32  ;;  %p2825_p3 = scmp.lt.s32.totalorder %s2107_s21, %s2107_s21 }
  0x39   :  { %2125 = vmatmul.mubr.msk.bf16.gmra.mrb[4].mxu0 %vm145_vm0, %v102_v24  ;;  %p2821_p2 = scmp.ne.s32.totalorder %s2107_s21, %s2820_s22  ;;  %p2826_p4 = scmp.lt.s32.totalorder %s2820_s22, %s2820_s22 }
  0x3a   :  { %2129 = vmatmul.mubr.msk.bf16.gmra.mrb[4].mxu1 %vm145_vm0, %v102_v24  ;;  %469 = vmatpush1.bf16.msra.mxu0 %v2965_v25 }
  0x3b   :  { %510 = vmatpush1.bf16.msra.mxu1 %v2967_v26  ;;  %470 = vmatprep.subr.bf16.mxu0 %v2971_v27  ;;  %p2827_p5 = por %p2826_p4, %p2825_p3 }
  0x3c   :  { %511 = vmatprep.subr.bf16.mxu1 %v2973_v28  ;;  %210 = vmatprep.mubr.bf16.mxu0 %v3491_v0 }
  0x3d   :  { %283 = vmatprep.mubr.bf16.mxu1 %v3491_v0  ;;  %p2828_p6 = pnand %p2827_p5, %p2821_p2 }
  0x3e   :  { %471 = vmatpush1.bf16.msra.mxu0 %v2975_v29 }
  0x3f   :  { %512 = vmatpush1.bf16.msra.mxu1 %v2977_v30  ;;  %472 = vmatprep.subr.bf16.mxu0 %v2989_v33 }
  0x40   :  { %513 = vmatprep.subr.bf16.mxu1 %v2993_v34 }
  0x41   :  { %2126 = vmatmul.mubr.msk.bf16.gmra.mrb[8].mxu0 %vm145_vm0, %v103_v35 }
  0x42   :  { %2130 = vmatmul.mubr.msk.bf16.gmra.mrb[8].mxu1 %vm145_vm0, %v103_v35  ;;  %473 = vmatpush1.bf16.msra.mxu0 %v2997_v36 }
  0x43   :  { %514 = vmatpush1.bf16.msra.mxu1 %v2999_v37  ;;  %474 = vmatprep.subr.bf16.mxu0 %v3003_v38 }
  0x44   :  { %515 = vmatprep.subr.bf16.mxu1 %v3007_v39  ;;  %220 = vmatprep.mubr.bf16.mxu0 %v3491_v0 }
  0x45   :  { %293 = vmatprep.mubr.bf16.mxu1 %v3491_v0 }
  0x46   :  { %475 = vmatpush1.bf16.msra.mxu0 %v3009_v40 }
  0x47   :  { %516 = vmatpush1.bf16.msra.mxu1 %v3013_v41  ;;  %476 = vmatprep.subr.bf16.mxu0 %v3025_v44 }
  0x48   :  { %517 = vmatprep.subr.bf16.mxu1 %v3027_v45 }
  0x49   :  { %2127 = vmatmul.mubr.msk.bf16.gmra.mrb[12].mxu0 %vm145_vm0, %v104_v46 }
  0x4a   :  { %2131 = vmatmul.mubr.msk.bf16.gmra.mrb[12].mxu1 %vm145_vm0, %v104_v46  ;;  %477 = vmatpush1.bf16.msra.mxu0 %v3033_v47 }
  0x4b   :  { %518 = vmatpush1.bf16.msra.mxu1 %v3035_v48  ;;  %478 = vmatprep.subr.bf16.mxu0 %v3039_v49 }
  0x4c   :  { %519 = vmatprep.subr.bf16.mxu1 %v3041_v50  ;;  %496 = vmatprep.mubr.bf16.mxu0 %v3491_v0 }
  0x4d   :  { %537 = vmatprep.mubr.bf16.mxu1 %v3491_v0 }
  0x4e   :  { %479 = vmatpush1.bf16.msra.mxu0 %v3047_v51 }
  0x4f   :  { %520 = vmatpush1.bf16.msra.mxu1 %v3049_v52  ;;  %575 = vmatprep.subr.bf16.mxu0 %v2927_v11 }
  0x50   :  { %616 = vmatprep.subr.bf16.mxu1 %v2929_v13 }
  0x51   :  { %497 = vmatmul.mubr.bf16.vlgmr.msra.gmra.mrb[16].mxu0 %v3491_v0 }
  0x52   :  { %538 = vmatmul.mubr.bf16.vlgmr.msra.gmra.mrb[16].mxu1 %v3491_v0  ;;  %576 = vmatpush1.bf16.msra.mxu0 %v2931_v14 }
  0x53   :  { %617 = vmatpush1.bf16.msra.mxu1 %v2933_v15  ;;  %577 = vmatprep.subr.bf16.mxu0 %v2937_v16 }
  0x54   :  { %618 = vmatprep.subr.bf16.mxu1 %v2939_v17  ;;  %607 = vmatprep.mubr.bf16.mxu0 %v3491_v0 }
  0x55   :  { %648 = vmatprep.mubr.bf16.mxu1 %v3491_v0 }
  0x56   :  { %578 = vmatpush1.bf16.msra.mxu0 %v2941_v18 }
  0x57   :  { %619 = vmatpush1.bf16.msra.mxu1 %v2945_v19  ;;  %579 = vmatprep.subr.bf16.mxu0 %v2955_v22 }
  0x58   :  { %620 = vmatprep.subr.bf16.mxu1 %v2959_v23 }
  0x5a   :  { %580 = vmatpush1.bf16.msra.mxu0 %v2965_v25 }
  0x5b   :  { %621 = vmatpush1.bf16.msra.mxu1 %v2967_v26  ;;  %581 = vmatprep.subr.bf16.mxu0 %v2971_v27 }
  0x5c   :  { %622 = vmatprep.subr.bf16.mxu1 %v2973_v28 }
  0x5e   :  { %582 = vmatpush1.bf16.msra.mxu0 %v2975_v29 }
  0x5f   :  { %623 = vmatpush1.bf16.msra.mxu1 %v2977_v30  ;;  %583 = vmatprep.subr.bf16.mxu0 %v2989_v33 }
  0x60   :  { %624 = vmatprep.subr.bf16.mxu1 %v2993_v34 }
  0x62   :  { %584 = vmatpush1.bf16.msra.mxu0 %v2997_v36 }
  0x63   :  { %625 = vmatpush1.bf16.msra.mxu1 %v2999_v37  ;;  %585 = vmatprep.subr.bf16.mxu0 %v3003_v38 }
  0x64   :  { %626 = vmatprep.subr.bf16.mxu1 %v3007_v39 }
  0x66   :  { %586 = vmatpush1.bf16.msra.mxu0 %v3009_v40 }
  0x67   :  { %627 = vmatpush1.bf16.msra.mxu1 %v3013_v41  ;;  %587 = vmatprep.subr.bf16.mxu0 %v3025_v44 }
  0x68   :  { %628 = vmatprep.subr.bf16.mxu1 %v3027_v45 }
  0x6a   :  { %588 = vmatpush1.bf16.msra.mxu0 %v3033_v47 }
  0x6b   :  { %629 = vmatpush1.bf16.msra.mxu1 %v3035_v48  ;;  %589 = vmatprep.subr.bf16.mxu0 %v3039_v49 }
  0x6c   :  { %630 = vmatprep.subr.bf16.mxu1 %v3041_v50 }
  0x6e   :  { %590 = vmatpush1.bf16.msra.mxu0 %v3047_v51 }
  0x6f   :  { %631 = vmatpush1.bf16.msra.mxu1 %v3049_v52  ;;  %686 = vmatprep.subr.bf16.mxu0 %v2927_v11 }
  0x70   :  { %727 = vmatprep.subr.bf16.mxu1 %v2929_v13 }
 0x104   :  { %v192_v53 = vpop.f32.mrb[0].mxu0 }
 0x105   :  { %v265_v54 = vpop.f32.mrb[0].mxu1  ;;  %v194_v55 = vpop.f32.mrb[1].mxu0 }
 0x106   :  { %v267_v56 = vpop.f32.mrb[1].mxu1  ;;  %v3095_v57 = vpop.f32.mrb[2].mxu0 }
 0x107   :  { %v3097_v58 = vpop.f32.mrb[2].mxu1  ;;  %v3099_v59 = vpop.f32.mrb[3].mxu0 }
 0x108   :  { %v3101_v60 = vpop.f32.mrb[3].mxu1 }
 0x10c   :  { %v3103_v61 = vpop.f32.mrb[4].mxu0 }
 0x10d   :  { %v3105_v62 = vpop.f32.mrb[4].mxu1  ;;  %v3107_v63 = vpop.f32.mrb[5].mxu0 }
 0x10e   :  { %v3109_v1 = vpop.f32.mrb[5].mxu1  ;;  %v3111_v2 = vpop.f32.mrb[6].mxu0 }
 0x10f   :  { %v3113_v3 = vpop.f32.mrb[6].mxu1  ;;  %v3115_v4 = vpop.f32.mrb[7].mxu0 }
 0x110   :  { %3493 = vst [vmem:[#allocation11_spill] sm:$0xff] %v3115_v4  ;;  %v3117_v5 = vpop.f32.mrb[7].mxu1 }
 0x111   :  { %3494 = vst [vmem:[#allocation12_spill] sm:$0xff] %v3117_v5 }
 0x114   :  { %v3119_v6 = vpop.f32.mrb[8].mxu0 }
 0x115   :  { %3495 = vst [vmem:[#allocation13_spill] sm:$0xff] %v3119_v6  ;;  %v3121_v7 = vpop.f32.mrb[8].mxu1  ;;  %v3123_v8 = vpop.f32.mrb[9].mxu0 }
 0x116   :  { %3496 = vst [vmem:[#allocation14_spill] sm:$0xff] %v3121_v7  ;;  %3497 = vst [vmem:[#allocation15_spill] sm:$0xff] %v3123_v8  ;;  %v3125_v9 = vpop.f32.mrb[9].mxu1  ;;  %v3127_v10 = vpop.f32.mrb[10].mxu0 }
 0x117   :  { %3498 = vst [vmem:[#allocation16_spill] sm:$0xff] %v3125_v9  ;;  %3499 = vst [vmem:[#allocation17_spill] sm:$0xff] %v3127_v10  ;;  %v3129_v12 = vpop.f32.mrb[10].mxu1  ;;  %v3131_v20 = vpop.f32.mrb[11].mxu0 }
 0x118   :  { %3500 = vst [vmem:[#allocation18_spill] sm:$0xff] %v3129_v12  ;;  %3501 = vst [vmem:[#allocation19_spill] sm:$0xff] %v3131_v20  ;;  %v3133_v21 = vpop.f32.mrb[11].mxu1 }
 0x119   :  { %3502 = vst [vmem:[#allocation20_spill] sm:$0xff] %v3133_v21 }
 0x11c   :  { %v3135_v24 = vpop.f32.mrb[12].mxu0 }
 0x11d   :  { %3503 = vst [vmem:[#allocation21_spill] sm:$0xff] %v3135_v24  ;;  %v3137_v31 = vpop.f32.mrb[12].mxu1  ;;  %v3139_v32 = vpop.f32.mrb[13].mxu0 }
 0x11e   :  { %3504 = vst [vmem:[#allocation22_spill] sm:$0xff] %v3137_v31  ;;  %3505 = vst [vmem:[#allocation23_spill] sm:$0xff] %v3139_v32  ;;  %v3141_v35 = vpop.f32.mrb[13].mxu1  ;;  %v3143_v42 = vpop.f32.mrb[14].mxu0 }
 0x11f   :  { %3506 = vst [vmem:[#allocation24_spill] sm:$0xff] %v3141_v35  ;;  %3507 = vst [vmem:[#allocation25_spill] sm:$0xff] %v3143_v42  ;;  %v3145_v43 = vpop.f32.mrb[14].mxu1  ;;  %v3147_v46 = vpop.f32.mrb[15].mxu0 }
 0x120   :  { %3508 = vst [vmem:[#allocation26_spill] sm:$0xff] %v3145_v43  ;;  %3509 = vst [vmem:[#allocation27_spill] sm:$0xff] %v3147_v46  ;;  %v3149_v0 = vpop.f32.mrb[15].mxu1 }
 0x121   :  { %3510 = vst [vmem:[#allocation28_spill] sm:$0xff] %v3149_v0 }
 0x124   :  { %v498_v12 = vpop.f32.mrb[16].mxu0 }
 0x125   :  { %v539_v20 = vpop.f32.mrb[16].mxu1  ;;  %v546_v10 = vadd.f32 %v498_v12, %v192_v53  ;;  %v500_v9 = vpop.f32.mrb[17].mxu0 }
 0x126   :  { %v548_v21 = vadd.f32 %v539_v20, %v265_v54  ;;  %v541_v24 = vpop.f32.mrb[17].mxu1  ;;  %v547_v8 = vadd.f32 %v500_v9, %v194_v55  ;;  %v502_v7 = vpop.f32.mrb[18].mxu0 }
 0x127   :  { %v549_v31 = vadd.f32 %v541_v24, %v267_v56  ;;  %v543_v32 = vpop.f32.mrb[18].mxu1  ;;  %v2164_v6 = vmul.f32 -1.442695, %v546_v10  ;;  %v503_v35 = vpop.f32.mrb[19].mxu0 }
 0x128   :  { %v544_v5 = vpop.f32.mrb[19].mxu1  ;;  %v2165_v42 = vmul.f32 -1.442695, %v547_v8 }
 0x129   :  { %2606 = vpow2.f32 %v2164_v6  ;;  %v2166_v43 = vmul.f32 -1.442695, %v549_v31 }
 0x12a   :  { %2608 = vpow2.f32 %v2165_v42 }
 0x12b   :  { %2610 = vpow2.f32 %v2166_v43 }
 0x12c   :  { %2612 = vtanh.f32 %v548_v21 }
 0x133   :  { %v2607_v46 = vpop.eup %2606 }
 0x134   :  { %v2609_v4 = vpop.eup %2608  ;;  %v553_v0 = vadd.f32 1.0, %v2607_v46 }
 0x135   :  { %v559_v53 = vadd.f32 1.0, %v2609_v4  ;;  %v2611_v54 = vpop.eup %2610 }
 0x136   :  { %2614 = vrcp.f32 %v553_v0  ;;  %v2613_v55 = vpop.eup %2612  ;;  %v566_v10 = vadd.f32 1.0, %v2611_v54  ;;  %v3511_v0 = vmov 0  }
 0x137   :  { %2616 = vrcp.f32 %v559_v53 }
 0x138   :  { %2618 = vrcp.f32 %v566_v10 }
 0x140   :  { %v2615_v56 = vpop.eup %2614 }
 0x141   :  { %v2617_v7 = vpop.eup %2616  ;;  %v570_v9 = vmul.f32 %v2615_v56, %v2613_v55 }
 0x142   :  { %v569_v12 = vmul.f32 0.0, %v2617_v7  ;;  %v2619_v6 = vpop.eup %2618 }
 0x144   :  { %v3151_v5 = vadd.f32 %v570_v9, %v569_v12 }
 0x146   :  { %2620 = vtanh.f32 %v3151_v5 }
 0x150   :  { %v2621_v8 = vpop.eup %2620 }
 0x151   :  { %v573_v20 = vmul.f32 %v2621_v8, %v2619_v6 }
 0x153   :  { %v574_v24 = vpack.c.bf16 %v573_v20, %v573_v20 }
 0x155   :  { %608 = vmatmul.mubr.bf16.vlgmr.msra.gmra.mrb[20].mxu0 %v574_v24  ;;  %649 = vmatmul.mubr.bf16.vlgmr.msra.gmra.mrb[20].mxu1 %v574_v24 }
 0x156   :  { %687 = vmatpush1.bf16.msra.mxu0 %v2931_v14  ;;  %728 = vmatpush1.bf16.msra.mxu1 %v2933_v15 }
 0x157   :  { %688 = vmatprep.subr.bf16.mxu0 %v2937_v16  ;;  %729 = vmatprep.subr.bf16.mxu1 %v2939_v17 }
 0x158   :  { %718 = vmatprep.mubr.bf16.mxu0 %v3511_v0  ;;  %759 = vmatprep.mubr.bf16.mxu1 %v3511_v0 }
 0x15a   :  { %689 = vmatpush1.bf16.msra.mxu0 %v2941_v18  ;;  %730 = vmatpush1.bf16.msra.mxu1 %v2945_v19 }
 0x15b   :  { %690 = vmatprep.subr.bf16.mxu0 %v2955_v22  ;;  %731 = vmatprep.subr.bf16.mxu1 %v2959_v23 }
 0x15e   :  { %691 = vmatpush1.bf16.msra.mxu0 %v2965_v25  ;;  %732 = vmatpush1.bf16.msra.mxu1 %v2967_v26 }
 0x15f   :  { %692 = vmatprep.subr.bf16.mxu0 %v2971_v27  ;;  %733 = vmatprep.subr.bf16.mxu1 %v2973_v28 }
 0x162   :  { %693 = vmatpush1.bf16.msra.mxu0 %v2975_v29  ;;  %734 = vmatpush1.bf16.msra.mxu1 %v2977_v30 }
 0x163   :  { %694 = vmatprep.subr.bf16.mxu0 %v2989_v33  ;;  %735 = vmatprep.subr.bf16.mxu1 %v2993_v34 }
 0x166   :  { %695 = vmatpush1.bf16.msra.mxu0 %v2997_v36  ;;  %736 = vmatpush1.bf16.msra.mxu1 %v2999_v37 }
 0x167   :  { %696 = vmatprep.subr.bf16.mxu0 %v3003_v38  ;;  %737 = vmatprep.subr.bf16.mxu1 %v3007_v39 }
 0x16a   :  { %697 = vmatpush1.bf16.msra.mxu0 %v3009_v40  ;;  %738 = vmatpush1.bf16.msra.mxu1 %v3013_v41 }
 0x16b   :  { %698 = vmatprep.subr.bf16.mxu0 %v3025_v44  ;;  %739 = vmatprep.subr.bf16.mxu1 %v3027_v45 }
 0x16e   :  { %699 = vmatpush1.bf16.msra.mxu0 %v3033_v47  ;;  %740 = vmatpush1.bf16.msra.mxu1 %v3035_v48 }
 0x16f   :  { %700 = vmatprep.subr.bf16.mxu0 %v3039_v49  ;;  %741 = vmatprep.subr.bf16.mxu1 %v3041_v50 }
 0x172   :  { %701 = vmatpush1.bf16.msra.mxu0 %v3047_v51  ;;  %742 = vmatpush1.bf16.msra.mxu1 %v3049_v52 }
 0x173   :  { %797 = vmatprep.subr.bf16.mxu0 %v2927_v11  ;;  %838 = vmatprep.subr.bf16.mxu1 %v2929_v13 }
 0x228   :  { %v609_v4 = vpop.f32.mrb[20].mxu0  ;;  %v650_v21 = vpop.f32.mrb[20].mxu1 }
 0x229   :  { %v657_v31 = vadd.f32 %v609_v4, %v3095_v57  ;;  %v659_v32 = vadd.f32 %v650_v21, %v3097_v58  ;;  %v611_v35 = vpop.f32.mrb[21].mxu0  ;;  %v652_v42 = vpop.f32.mrb[21].mxu1 }
 0x22a   :  { %v658_v43 = vadd.f32 %v611_v35, %v3099_v59  ;;  %v660_v46 = vadd.f32 %v652_v42, %v3101_v60  ;;  %v613_v53 = vpop.f32.mrb[22].mxu0  ;;  %v654_v54 = vpop.f32.mrb[22].mxu1 }
 0x22b   :  { %v2167_v55 = vmul.f32 -1.442695, %v657_v31  ;;  %v614_v56 = vpop.f32.mrb[23].mxu0  ;;  %v655_v7 = vpop.f32.mrb[23].mxu1 }
 0x22c   :  { %v2168_v9 = vmul.f32 -1.442695, %v658_v43  ;;  %v2169_v10 = vmul.f32 -1.442695, %v660_v46 }
 0x22d   :  { %2622 = vpow2.f32 %v2167_v55 }
 0x22e   :  { %2624 = vpow2.f32 %v2168_v9 }
 0x22f   :  { %2626 = vpow2.f32 %v2169_v10 }
 0x230   :  { %2628 = vtanh.f32 %v659_v32 }
 0x237   :  { %v2623_v12 = vpop.eup %2622 }
 0x238   :  { %v2625_v6 = vpop.eup %2624  ;;  %v664_v57 = vadd.f32 1.0, %v2623_v12 }
 0x239   :  { %v670_v58 = vadd.f32 1.0, %v2625_v6  ;;  %v2627_v59 = vpop.eup %2626 }
 0x23a   :  { %2630 = vrcp.f32 %v664_v57  ;;  %v2629_v8 = vpop.eup %2628  ;;  %v677_v4 = vadd.f32 1.0, %v2627_v59 }
 0x23b   :  { %2632 = vrcp.f32 %v670_v58 }
 0x23c   :  { %2634 = vrcp.f32 %v677_v4 }
 0x244   :  { %v2631_v60 = vpop.eup %2630 }
 0x245   :  { %v2633_v20 = vpop.eup %2632  ;;  %v681_v24 = vmul.f32 %v2631_v60, %v2629_v8 }
 0x246   :  { %v680_v21 = vmul.f32 %v2633_v20, %v3151_v5  ;;  %v2635_v35 = vpop.eup %2634 }
 0x248   :  { %v3193_v31 = vadd.f32 %v681_v24, %v680_v21 }
 0x24a   :  { %2636 = vtanh.f32 %v3193_v31 }
 0x254   :  { %v2637_v42 = vpop.eup %2636 }
 0x255   :  { %v684_v43 = vmul.f32 %v2637_v42, %v2635_v35 }
 0x257   :  { %v685_v32 = vpack.c.bf16 %v684_v43, %v684_v43 }
 0x259   :  { %719 = vmatmul.mubr.bf16.vlgmr.msra.gmra.mrb[24].mxu0 %v685_v32  ;;  %760 = vmatmul.mubr.bf16.vlgmr.msra.gmra.mrb[24].mxu1 %v685_v32 }
 0x25a   :  { %798 = vmatpush1.bf16.msra.mxu0 %v2931_v14  ;;  %839 = vmatpush1.bf16.msra.mxu1 %v2933_v15 }
 0x25b   :  { %799 = vmatprep.subr.bf16.mxu0 %v2937_v16  ;;  %840 = vmatprep.subr.bf16.mxu1 %v2939_v17 }
 0x25c   :  { %829 = vmatprep.mubr.bf16.mxu0 %v3511_v0  ;;  %870 = vmatprep.mubr.bf16.mxu1 %v3511_v0 }
 0x25e   :  { %800 = vmatpush1.bf16.msra.mxu0 %v2941_v18  ;;  %841 = vmatpush1.bf16.msra.mxu1 %v2945_v19 }
 0x25f   :  { %801 = vmatprep.subr.bf16.mxu0 %v2955_v22  ;;  %842 = vmatprep.subr.bf16.mxu1 %v2959_v23 }
 0x262   :  { %802 = vmatpush1.bf16.msra.mxu0 %v2965_v25  ;;  %843 = vmatpush1.bf16.msra.mxu1 %v2967_v26 }
 0x263   :  { %803 = vmatprep.subr.bf16.mxu0 %v2971_v27  ;;  %844 = vmatprep.subr.bf16.mxu1 %v2973_v28 }
 0x266   :  { %804 = vmatpush1.bf16.msra.mxu0 %v2975_v29  ;;  %845 = vmatpush1.bf16.msra.mxu1 %v2977_v30 }
 0x267   :  { %805 = vmatprep.subr.bf16.mxu0 %v2989_v33  ;;  %846 = vmatprep.subr.bf16.mxu1 %v2993_v34 }
 0x26a   :  { %806 = vmatpush1.bf16.msra.mxu0 %v2997_v36  ;;  %847 = vmatpush1.bf16.msra.mxu1 %v2999_v37 }
 0x26b   :  { %807 = vmatprep.subr.bf16.mxu0 %v3003_v38  ;;  %848 = vmatprep.subr.bf16.mxu1 %v3007_v39 }
 0x26e   :  { %808 = vmatpush1.bf16.msra.mxu0 %v3009_v40  ;;  %849 = vmatpush1.bf16.msra.mxu1 %v3013_v41 }
 0x26f   :  { %809 = vmatprep.subr.bf16.mxu0 %v3025_v44  ;;  %850 = vmatprep.subr.bf16.mxu1 %v3027_v45 }
 0x272   :  { %810 = vmatpush1.bf16.msra.mxu0 %v3033_v47  ;;  %851 = vmatpush1.bf16.msra.mxu1 %v3035_v48 }
 0x273   :  { %811 = vmatprep.subr.bf16.mxu0 %v3039_v49  ;;  %852 = vmatprep.subr.bf16.mxu1 %v3041_v50 }
 0x276   :  { %812 = vmatpush1.bf16.msra.mxu0 %v3047_v51  ;;  %853 = vmatpush1.bf16.msra.mxu1 %v3049_v52 }
 0x277   :  { %908 = vmatprep.subr.bf16.mxu0 %v2927_v11  ;;  %949 = vmatprep.subr.bf16.mxu1 %v2929_v13 }
 0x32c   :  { %v720_v5 = vpop.f32.mrb[24].mxu0  ;;  %v761_v46 = vpop.f32.mrb[24].mxu1 }
 0x32d   :  { %v768_v53 = vadd.f32 %v720_v5, %v3103_v61  ;;  %v770_v54 = vadd.f32 %v761_v46, %v3105_v62  ;;  %v722_v55 = vpop.f32.mrb[25].mxu0  ;;  %v763_v56 = vpop.f32.mrb[25].mxu1 }
 0x32e   :  { %v769_v7 = vadd.f32 %v722_v55, %v3107_v63  ;;  %v771_v9 = vadd.f32 %v763_v56, %v3109_v1  ;;  %v724_v10 = vpop.f32.mrb[26].mxu0  ;;  %v765_v12 = vpop.f32.mrb[26].mxu1 }
 0x32f   :  { %v2170_v6 = vmul.f32 -1.442695, %v768_v53  ;;  %v725_v57 = vpop.f32.mrb[27].mxu0  ;;  %v766_v58 = vpop.f32.mrb[27].mxu1  ;;  %v3512_v10 = vld [vmem:[#allocation11_spill] sm:$0xff] }
 0x330   :  { %v2171_v59 = vmul.f32 -1.442695, %v769_v7  ;;  %v2172_v8 = vmul.f32 -1.442695, %v771_v9 }
 0x331   :  { %2638 = vpow2.f32 %v2170_v6  ;;  %v3513_v6 = vld [vmem:[#allocation12_spill] sm:$0xff] }
 0x332   :  { %2640 = vpow2.f32 %v2171_v59 }
 0x333   :  { %2642 = vpow2.f32 %v2172_v8 }
 0x334   :  { %2644 = vtanh.f32 %v770_v54 }
 0x33b   :  { %v2639_v60 = vpop.eup %2638 }
 0x33c   :  { %v2641_v20 = vpop.eup %2640  ;;  %v775_v61 = vadd.f32 1.0, %v2639_v60 }
 0x33d   :  { %v781_v62 = vadd.f32 1.0, %v2641_v20  ;;  %v2643_v63 = vpop.eup %2642 }
 0x33e   :  { %2646 = vrcp.f32 %v775_v61  ;;  %v2645_v24 = vpop.eup %2644  ;;  %v788_v35 = vadd.f32 1.0, %v2643_v63 }
 0x33f   :  { %2648 = vrcp.f32 %v781_v62 }
 0x340   :  { %2650 = vrcp.f32 %v788_v35 }
 0x348   :  { %v2647_v1 = vpop.eup %2646 }
 0x349   :  { %v2649_v4 = vpop.eup %2648  ;;  %v792_v21 = vmul.f32 %v2647_v1, %v2645_v24 }
 0x34a   :  { %v791_v42 = vmul.f32 %v2649_v4, %v3193_v31  ;;  %v2651_v32 = vpop.eup %2650 }
 0x34c   :  { %v3235_v43 = vadd.f32 %v792_v21, %v791_v42 }
 0x34e   :  { %2652 = vtanh.f32 %v3235_v43 }
 0x358   :  { %v2653_v5 = vpop.eup %2652 }
 0x359   :  { %v795_v46 = vmul.f32 %v2653_v5, %v2651_v32 }
 0x35b   :  { %v796_v53 = vpack.c.bf16 %v795_v46, %v795_v46 }
 0x35d   :  { %830 = vmatmul.mubr.bf16.vlgmr.msra.gmra.mrb[28].mxu0 %v796_v53  ;;  %871 = vmatmul.mubr.bf16.vlgmr.msra.gmra.mrb[28].mxu1 %v796_v53 }
 0x35e   :  { %909 = vmatpush1.bf16.msra.mxu0 %v2931_v14  ;;  %950 = vmatpush1.bf16.msra.mxu1 %v2933_v15 }
 0x35f   :  { %910 = vmatprep.subr.bf16.mxu0 %v2937_v16  ;;  %951 = vmatprep.subr.bf16.mxu1 %v2939_v17 }
 0x360   :  { %940 = vmatprep.mubr.bf16.mxu0 %v3511_v0  ;;  %981 = vmatprep.mubr.bf16.mxu1 %v3511_v0 }
 0x362   :  { %911 = vmatpush1.bf16.msra.mxu0 %v2941_v18  ;;  %952 = vmatpush1.bf16.msra.mxu1 %v2945_v19 }
 0x363   :  { %912 = vmatprep.subr.bf16.mxu0 %v2955_v22  ;;  %953 = vmatprep.subr.bf16.mxu1 %v2959_v23 }
 0x366   :  { %913 = vmatpush1.bf16.msra.mxu0 %v2965_v25  ;;  %954 = vmatpush1.bf16.msra.mxu1 %v2967_v26 }
 0x367   :  { %914 = vmatprep.subr.bf16.mxu0 %v2971_v27  ;;  %955 = vmatprep.subr.bf16.mxu1 %v2973_v28 }
 0x36a   :  { %915 = vmatpush1.bf16.msra.mxu0 %v2975_v29  ;;  %956 = vmatpush1.bf16.msra.mxu1 %v2977_v30 }
 0x36b   :  { %916 = vmatprep.subr.bf16.mxu0 %v2989_v33  ;;  %957 = vmatprep.subr.bf16.mxu1 %v2993_v34 }
 0x36e   :  { %917 = vmatpush1.bf16.msra.mxu0 %v2997_v36  ;;  %958 = vmatpush1.bf16.msra.mxu1 %v2999_v37 }
 0x36f   :  { %918 = vmatprep.subr.bf16.mxu0 %v3003_v38  ;;  %959 = vmatprep.subr.bf16.mxu1 %v3007_v39 }
 0x372   :  { %919 = vmatpush1.bf16.msra.mxu0 %v3009_v40  ;;  %960 = vmatpush1.bf16.msra.mxu1 %v3013_v41 }
 0x373   :  { %920 = vmatprep.subr.bf16.mxu0 %v3025_v44  ;;  %961 = vmatprep.subr.bf16.mxu1 %v3027_v45 }
 0x376   :  { %921 = vmatpush1.bf16.msra.mxu0 %v3033_v47  ;;  %962 = vmatpush1.bf16.msra.mxu1 %v3035_v48 }
 0x377   :  { %922 = vmatprep.subr.bf16.mxu0 %v3039_v49  ;;  %963 = vmatprep.subr.bf16.mxu1 %v3041_v50 }
 0x37a   :  { %923 = vmatpush1.bf16.msra.mxu0 %v3047_v51  ;;  %964 = vmatpush1.bf16.msra.mxu1 %v3049_v52 }
 0x37b   :  { %1019 = vmatprep.subr.bf16.mxu0 %v2927_v11  ;;  %1060 = vmatprep.subr.bf16.mxu1 %v2929_v13 }
 0x430   :  { %v831_v31 = vpop.f32.mrb[28].mxu0  ;;  %v872_v54 = vpop.f32.mrb[28].mxu1 }
 0x431   :  { %v879_v55 = vadd.f32 %v831_v31, %v3111_v2  ;;  %v881_v56 = vadd.f32 %v872_v54, %v3113_v3  ;;  %v833_v7 = vpop.f32.mrb[29].mxu0  ;;  %v874_v9 = vpop.f32.mrb[29].mxu1 }
 0x432   :  { %v880_v12 = vadd.f32 %v833_v7, %v3512_v10  ;;  %v882_v57 = vadd.f32 %v874_v9, %v3513_v6  ;;  %v835_v58 = vpop.f32.mrb[30].mxu0  ;;  %v876_v59 = vpop.f32.mrb[30].mxu1  ;;  %v3517_v9 = vld [vmem:[#allocation16_spill] sm:$0xff] }
 0x433   :  { %v2173_v8 = vmul.f32 -1.442695, %v879_v55  ;;  %v836_v60 = vpop.f32.mrb[31].mxu0  ;;  %v877_v20 = vpop.f32.mrb[31].mxu1 }
 0x434   :  { %v2174_v61 = vmul.f32 -1.442695, %v880_v12  ;;  %v2175_v62 = vmul.f32 -1.442695, %v882_v57 }
 0x435   :  { %2654 = vpow2.f32 %v2173_v8 }
 0x436   :  { %2656 = vpow2.f32 %v2174_v61 }
 0x437   :  { %2658 = vpow2.f32 %v2175_v62 }
 0x438   :  { %2660 = vtanh.f32 %v881_v56  ;;  %v3516_v56 = vld [vmem:[#allocation15_spill] sm:$0xff] }
 0x43f   :  { %v2655_v63 = vpop.eup %2654 }
 0x440   :  { %v2657_v24 = vpop.eup %2656  ;;  %v886_v2 = vadd.f32 1.0, %v2655_v63 }
 0x441   :  { %v892_v3 = vadd.f32 1.0, %v2657_v24  ;;  %v2659_v1 = vpop.eup %2658 }
 0x442   :  { %2662 = vrcp.f32 %v886_v2  ;;  %v2661_v4 = vpop.eup %2660  ;;  %v899_v32 = vadd.f32 1.0, %v2659_v1 }
 0x443   :  { %2664 = vrcp.f32 %v892_v3 }
 0x444   :  { %2666 = vrcp.f32 %v899_v32 }
 0x44c   :  { %v2663_v21 = vpop.eup %2662 }
 0x44d   :  { %v2665_v35 = vpop.eup %2664  ;;  %v903_v42 = vmul.f32 %v2663_v21, %v2661_v4 }
 0x44e   :  { %v902_v5 = vmul.f32 %v2665_v35, %v3235_v43  ;;  %v2667_v53 = vpop.eup %2666 }
 0x450   :  { %v3277_v46 = vadd.f32 %v903_v42, %v902_v5 }
 0x452   :  { %2668 = vtanh.f32 %v3277_v46 }
 0x45c   :  { %v2669_v31 = vpop.eup %2668 }
 0x45d   :  { %v906_v54 = vmul.f32 %v2669_v31, %v2667_v53  ;;  %v3322_v53 = vld [vmem:[#allocation2 + $0x40] ss:$16 sps:$4 sm:$0xff]   ;;  %v3325_v31 = vld [vmem:[#allocation2 + $0x48] ss:$16 sps:$4 sm:$0xff]  }
 0x45f   :  { %v907_v55 = vpack.c.bf16 %v906_v54, %v906_v54  ;;  %v3331_v54 = vld [vmem:[#allocation2 + $0x6c] ss:$16 sps:$4 sm:$0xff]  }
 0x461   :  { %941 = vmatmul.mubr.bf16.vlgmr.msra.gmra.mrb[32].mxu0 %v907_v55  ;;  %982 = vmatmul.mubr.bf16.vlgmr.msra.gmra.mrb[32].mxu1 %v907_v55  ;;  %v3336_v55 = vld [vmem:[#allocation2 + $0x60] ss:$16 sps:$4 sm:$0xff]  }
 0x462   :  { %1020 = vmatpush1.bf16.msra.mxu0 %v2931_v14  ;;  %1061 = vmatpush1.bf16.msra.mxu1 %v2933_v15 }
 0x463   :  { %1021 = vmatprep.subr.bf16.mxu0 %v2937_v16  ;;  %1062 = vmatprep.subr.bf16.mxu1 %v2939_v17  ;;  %v3514_v16 = vld [vmem:[#allocation13_spill] sm:$0xff] }
 0x464   :  { %1051 = vmatprep.mubr.bf16.mxu0 %v3511_v0  ;;  %1092 = vmatprep.mubr.bf16.mxu1 %v3511_v0 }
 0x466   :  { %1022 = vmatpush1.bf16.msra.mxu0 %v2941_v18  ;;  %1063 = vmatpush1.bf16.msra.mxu1 %v2945_v19  ;;  %v3515_v18 = vld [vmem:[#allocation14_spill] sm:$0xff] }
 0x467   :  { %1023 = vmatprep.subr.bf16.mxu0 %v2955_v22  ;;  %1064 = vmatprep.subr.bf16.mxu1 %v2959_v23 }
 0x46a   :  { %1024 = vmatpush1.bf16.msra.mxu0 %v2965_v25  ;;  %1065 = vmatpush1.bf16.msra.mxu1 %v2967_v26 }
 0x46b   :  { %1025 = vmatprep.subr.bf16.mxu0 %v2971_v27  ;;  %1066 = vmatprep.subr.bf16.mxu1 %v2973_v28 }
 0x46e   :  { %1026 = vmatpush1.bf16.msra.mxu0 %v2975_v29  ;;  %1067 = vmatpush1.bf16.msra.mxu1 %v2977_v30 }
 0x46f   :  { %1027 = vmatprep.subr.bf16.mxu0 %v2989_v33  ;;  %1068 = vmatprep.subr.bf16.mxu1 %v2993_v34 }
 0x472   :  { %1028 = vmatpush1.bf16.msra.mxu0 %v2997_v36  ;;  %1069 = vmatpush1.bf16.msra.mxu1 %v2999_v37 }
 0x473   :  { %1029 = vmatprep.subr.bf16.mxu0 %v3003_v38  ;;  %1070 = vmatprep.subr.bf16.mxu1 %v3007_v39 }
 0x476   :  { %1030 = vmatpush1.bf16.msra.mxu0 %v3009_v40  ;;  %1071 = vmatpush1.bf16.msra.mxu1 %v3013_v41 }
 0x477   :  { %1031 = vmatprep.subr.bf16.mxu0 %v3025_v44  ;;  %1072 = vmatprep.subr.bf16.mxu1 %v3027_v45 }
 0x47a   :  { %1032 = vmatpush1.bf16.msra.mxu0 %v3033_v47  ;;  %1073 = vmatpush1.bf16.msra.mxu1 %v3035_v48 }
 0x47b   :  { %1033 = vmatprep.subr.bf16.mxu0 %v3039_v49  ;;  %1074 = vmatprep.subr.bf16.mxu1 %v3041_v50 }
 0x47e   :  { %1034 = vmatpush1.bf16.msra.mxu0 %v3047_v51  ;;  %1075 = vmatpush1.bf16.msra.mxu1 %v3049_v52 }
 0x47f   :  { %1130 = vmatprep.subr.bf16.mxu0 %v2927_v11  ;;  %1171 = vmatprep.subr.bf16.mxu1 %v2929_v13 }
 0x534   :  { %v942_v14 = vpop.f32.mrb[32].mxu0  ;;  %v983_v15 = vpop.f32.mrb[32].mxu1 }
 0x535   :  { %v990_v17 = vadd.f32 %v942_v14, %v3514_v16  ;;  %v992_v19 = vadd.f32 %v983_v15, %v3515_v18  ;;  %v944_v22 = vpop.f32.mrb[33].mxu0  ;;  %v985_v43 = vpop.f32.mrb[33].mxu1  ;;  %v3339_v14 = vld [vmem:[#allocation2 + $0x68] ss:$16 sps:$4 sm:$0xff]   ;;  %v3342_v15 = vld [vmem:[#allocation2 + $0x84] ss:$16 sps:$4 sm:$0xff]  }
 0x536   :  { %v991_v7 = vadd.f32 %v944_v22, %v3516_v56  ;;  %v993_v10 = vadd.f32 %v985_v43, %v3517_v9  ;;  %v946_v12 = vpop.f32.mrb[34].mxu0  ;;  %v987_v6 = vpop.f32.mrb[34].mxu1 }
 0x537   :  { %v2176_v57 = vmul.f32 -1.442695, %v990_v17  ;;  %v947_v58 = vpop.f32.mrb[35].mxu0  ;;  %v988_v59 = vpop.f32.mrb[35].mxu1 }
 0x538   :  { %v2177_v11 = vmul.f32 -1.442695, %v991_v7  ;;  %v2178_v13 = vmul.f32 -1.442695, %v993_v10  ;;  %v2753_v59 = vld [vmem:[#allocation2 + $0x8c] ss:$16 sps:$4 sm:$0xff]  }
 0x539   :  { %2670 = vpow2.f32 %v2176_v57 }
 0x53a   :  { %2672 = vpow2.f32 %v2177_v11  ;;  %v2754_v11 = vld [vmem:[#allocation2 + $0x80] ss:$16 sps:$4 sm:$0xff]  }
 0x53b   :  { %2674 = vpow2.f32 %v2178_v13  ;;  %v2755_v13 = vld [vmem:[#allocation2 + $0x88] ss:$16 sps:$4 sm:$0xff]  }
 0x53c   :  { %2676 = vtanh.f32 %v992_v19 }
 0x543   :  { %v2671_v8 = vpop.eup %2670 }
 0x544   :  { %v2673_v60 = vpop.eup %2672  ;;  %v997_v20 = vadd.f32 1.0, %v2671_v8  ;;  %v2756_v8 = vld [vmem:[#allocation2 + $0xa4] ss:$16 sps:$4 sm:$0xff]  }
 0x545   :  { %v1003_v61 = vadd.f32 1.0, %v2673_v60  ;;  %v2675_v62 = vpop.eup %2674  ;;  %v2757_v60 = vld [vmem:[#allocation2 + $0xac] ss:$16 sps:$4 sm:$0xff]  }
 0x546   :  { %2678 = vrcp.f32 %v997_v20  ;;  %v2677_v63 = vpop.eup %2676  ;;  %v1010_v1 = vadd.f32 1.0, %v2675_v62  ;;  %v2758_v20 = vld [vmem:[#allocation2 + $0xa0] ss:$16 sps:$4 sm:$0xff]   ;;  %v2761_v62 = vld [vmem:[#allocation2 + $0xcc] ss:$16 sps:$4 sm:$0xff]  }
 0x547   :  { %2680 = vrcp.f32 %v1003_v61  ;;  %v2759_v61 = vld [vmem:[#allocation2 + $0xa8] ss:$16 sps:$4 sm:$0xff]  }
 0x548   :  { %2682 = vrcp.f32 %v1010_v1  ;;  %v2766_v1 = vld [vmem:[#allocation2 + $0xe0] ss:$16 sps:$4 sm:$0xff]  }
 0x550   :  { %v2679_v24 = vpop.eup %2678 }
 0x551   :  { %v2681_v2 = vpop.eup %2680  ;;  %v1014_v3 = vmul.f32 %v2679_v24, %v2677_v63  ;;  %v2762_v63 = vld [vmem:[#allocation2 + $0xc0] ss:$16 sps:$4 sm:$0xff]   ;;  %v2763_v24 = vld [vmem:[#allocation2 + $0xc8] ss:$16 sps:$4 sm:$0xff]  }
 0x552   :  { %v1013_v4 = vmul.f32 %v2681_v2, %v3277_v46  ;;  %v2683_v35 = vpop.eup %2682  ;;  %v3328_v46 = vld [vmem:[#allocation2 + $0x64] ss:$16 sps:$4 sm:$0xff]  }
 0x553   :  { %v2764_v2 = vld [vmem:[#allocation2 + $0xe4] ss:$16 sps:$4 sm:$0xff]  }
 0x554   :  { %v3319_v21 = vadd.f32 %v1014_v3, %v1013_v4  ;;  %v2765_v3 = vld [vmem:[#allocation2 + $0xec] ss:$16 sps:$4 sm:$0xff]   ;;  %v2767_v4 = vld [vmem:[#allocation2 + $0xe8] ss:$16 sps:$4 sm:$0xff]  }
 0x556   :  { %2684 = vtanh.f32 %v3319_v21 }
 0x560   :  { %v2685_v42 = vpop.eup %2684 }
 0x561   :  { %v1017_v32 = vmul.f32 %v2685_v42, %v2683_v35  ;;  %v2769_v35 = vld [vmem:[#allocation2 + $0x10c] ss:$16 sps:$4 sm:$0xff]   ;;  %v2770_v42 = vld [vmem:[#allocation2 + $0x100] ss:$16 sps:$4 sm:$0xff]  }
 0x563   :  { %v1018_v5 = vpack.c.bf16 %v1017_v32, %v1017_v32  ;;  %v2771_v32 = vld [vmem:[#allocation2 + $0x108] ss:$16 sps:$4 sm:$0xff]  }
 0x565   :  { %1052 = vmatmul.mubr.bf16.vlgmr.msra.gmra.mrb[36].mxu0 %v1018_v5  ;;  %1093 = vmatmul.mubr.bf16.vlgmr.msra.gmra.mrb[36].mxu1 %v1018_v5  ;;  %v2772_v5 = vld [vmem:[#allocation2 + $0x124] ss:$16 sps:$4 sm:$0xff]  }
 0x566   :  { %1131 = vmatpush1.bf16.msra.mxu0 %v3322_v53  ;;  %1172 = vmatpush1.bf16.msra.mxu1 %v3325_v31 }
 0x567   :  { %1132 = vmatprep.subr.bf16.mxu0 %v3328_v46  ;;  %1173 = vmatprep.subr.bf16.mxu1 %v3331_v54 }
 0x568   :  { %1162 = vmatprep.mubr.bf16.mxu0 %v3511_v0  ;;  %1203 = vmatprep.mubr.bf16.mxu1 %v3511_v0 }
 0x56a   :  { %1133 = vmatpush1.bf16.msra.mxu0 %v3336_v55  ;;  %1174 = vmatpush1.bf16.msra.mxu1 %v3339_v14 }
 0x56b   :  { %1134 = vmatprep.subr.bf16.mxu0 %v3342_v15  ;;  %1175 = vmatprep.subr.bf16.mxu1 %v2959_v23  ;;  %v2751_v23 = vld [vmem:[#allocation2 + $0x44] ss:$16 sps:$4 sm:$0xff]  }
 0x56e   :  { %1135 = vmatpush1.bf16.msra.mxu0 %v2965_v25  ;;  %1176 = vmatpush1.bf16.msra.mxu1 %v2967_v26  ;;  %v2752_v25 = vld [vmem:[#allocation2 + $0x4c] ss:$16 sps:$4 sm:$0xff]  }
 0x56f   :  { %1136 = vmatprep.subr.bf16.mxu0 %v2971_v27  ;;  %1177 = vmatprep.subr.bf16.mxu1 %v2973_v28  ;;  %v3518_v28 = vld [vmem:[#allocation17_spill] sm:$0xff] }
 0x572   :  { %1137 = vmatpush1.bf16.msra.mxu0 %v2975_v29  ;;  %1178 = vmatpush1.bf16.msra.mxu1 %v2977_v30  ;;  %v3519_v30 = vld [vmem:[#allocation18_spill] sm:$0xff] }
 0x573   :  { %1138 = vmatprep.subr.bf16.mxu0 %v2989_v33  ;;  %1179 = vmatprep.subr.bf16.mxu1 %v2993_v34 }
 0x576   :  { %1139 = vmatpush1.bf16.msra.mxu0 %v2997_v36  ;;  %1180 = vmatpush1.bf16.msra.mxu1 %v2999_v37  ;;  %v3520_v37 = vld [vmem:[#allocation19_spill] sm:$0xff] }
 0x577   :  { %1140 = vmatprep.subr.bf16.mxu0 %v3003_v38  ;;  %1181 = vmatprep.subr.bf16.mxu1 %v3007_v39  ;;  %v3521_v39 = vld [vmem:[#allocation20_spill] sm:$0xff] }
 0x57a   :  { %1141 = vmatpush1.bf16.msra.mxu0 %v3009_v40  ;;  %1182 = vmatpush1.bf16.msra.mxu1 %v3013_v41 }
 0x57b   :  { %1142 = vmatprep.subr.bf16.mxu0 %v3025_v44  ;;  %1183 = vmatprep.subr.bf16.mxu1 %v3027_v45 }
 0x57e   :  { %1143 = vmatpush1.bf16.msra.mxu0 %v3033_v47  ;;  %1184 = vmatpush1.bf16.msra.mxu1 %v3035_v48 }
 0x57f   :  { %1144 = vmatprep.subr.bf16.mxu0 %v3039_v49  ;;  %1185 = vmatprep.subr.bf16.mxu1 %v3041_v50 }
 0x582   :  { %1145 = vmatpush1.bf16.msra.mxu0 %v3047_v51  ;;  %1186 = vmatpush1.bf16.msra.mxu1 %v3049_v52 }
 0x583   :  { %1241 = vmatprep.subr.bf16.mxu0 %v2751_v23  ;;  %1282 = vmatprep.subr.bf16.mxu1 %v2752_v25  ;;  %v3522_v23 = vld [vmem:[#allocation21_spill] sm:$0xff] }
 0x638   :  { %v1053_v26 = vpop.f32.mrb[36].mxu0  ;;  %v1094_v27 = vpop.f32.mrb[36].mxu1 }
 0x639   :  { %v1101_v29 = vadd.f32 %v1053_v26, %v3518_v28  ;;  %v1103_v33 = vadd.f32 %v1094_v27, %v3519_v30  ;;  %v1055_v34 = vpop.f32.mrb[37].mxu0  ;;  %v1096_v36 = vpop.f32.mrb[37].mxu1  ;;  %v3523_v26 = vld [vmem:[#allocation22_spill] sm:$0xff]  ;;  %v3524_v30 = vld [vmem:[#allocation23_spill] sm:$0xff] }
 0x63a   :  { %v1102_v38 = vadd.f32 %v1055_v34, %v3520_v37  ;;  %v1104_v40 = vadd.f32 %v1096_v36, %v3521_v39  ;;  %v1057_v41 = vpop.f32.mrb[38].mxu0  ;;  %v1098_v44 = vpop.f32.mrb[38].mxu1  ;;  %v3525_v34 = vld [vmem:[#allocation24_spill] sm:$0xff] }
 0x63b   :  { %v2179_v45 = vmul.f32 -1.442695, %v1101_v29  ;;  %v1058_v47 = vpop.f32.mrb[39].mxu0  ;;  %v1099_v48 = vpop.f32.mrb[39].mxu1 }
 0x63c   :  { %v2180_v49 = vmul.f32 -1.442695, %v1102_v38  ;;  %v2181_v50 = vmul.f32 -1.442695, %v1104_v40 }
 0x63d   :  { %2686 = vpow2.f32 %v2179_v45 }
 0x63e   :  { %2688 = vpow2.f32 %v2180_v49 }
 0x63f   :  { %2690 = vpow2.f32 %v2181_v50 }
 0x640   :  { %2692 = vtanh.f32 %v1103_v33 }
 0x647   :  { %v2687_v51 = vpop.eup %2686 }
 0x648   :  { %v2689_v52 = vpop.eup %2688  ;;  %v1108_v16 = vadd.f32 1.0, %v2687_v51 }
 0x649   :  { %v1114_v17 = vadd.f32 1.0, %v2689_v52  ;;  %v2691_v18 = vpop.eup %2690 }
 0x64a   :  { %2694 = vrcp.f32 %v1108_v16  ;;  %v2693_v19 = vpop.eup %2692  ;;  %v1121_v7 = vadd.f32 1.0, %v2691_v18 }
 0x64b   :  { %2696 = vrcp.f32 %v1114_v17 }
 0x64c   :  { %2698 = vrcp.f32 %v1121_v7 }
 0x654   :  { %v2695_v22 = vpop.eup %2694 }
 0x655   :  { %v2697_v43 = vpop.eup %2696  ;;  %v1125_v56 = vmul.f32 %v2695_v22, %v2693_v19 }
 0x656   :  { %v1124_v9 = vmul.f32 %v2697_v43, %v3319_v21  ;;  %v2699_v12 = vpop.eup %2698  ;;  %v2768_v21 = vld [vmem:[#allocation2 + $0x104] ss:$16 sps:$4 sm:$0xff]  }
 0x658   :  { %v3373_v10 = vadd.f32 %v1125_v56, %v1124_v9 }
 0x65a   :  { %2700 = vtanh.f32 %v3373_v10 }
 0x664   :  { %v2701_v6 = vpop.eup %2700 }
 0x665   :  { %v1128_v57 = vmul.f32 %v2701_v6, %v2699_v12  ;;  %v1435_v6 = vld [vmem:[#allocation5 + $0x10] sm:$0x3] }
 0x667   :  { %v1129_v58 = vpack.c.bf16 %v1128_v57, %v1128_v57  ;;  %v1352_v57 = vld [vmem:[#allocation5] sm:$0xff] }
 0x669   :  { %1163 = vmatmul.mubr.bf16.vlgmr.msra.gmra.mrb[40].mxu0 %v1129_v58  ;;  %1204 = vmatmul.mubr.bf16.vlgmr.msra.gmra.mrb[40].mxu1 %v1129_v58  ;;  %v1558_v58 = vld [vmem:[#allocation5 + $0x138] sm:$0xff] }
 0x66a   :  { %1242 = vmatpush1.bf16.msra.mxu0 %v3322_v53  ;;  %1283 = vmatpush1.bf16.msra.mxu1 %v3325_v31  ;;  %v2773_v53 = vld [vmem:[#allocation2 + $0x12c] ss:$16 sps:$4 sm:$0xff]   ;;  %v2774_v31 = vld [vmem:[#allocation2 + $0x120] ss:$16 sps:$4 sm:$0xff]  }
 0x66b   :  { %1243 = vmatprep.subr.bf16.mxu0 %v3328_v46  ;;  %1284 = vmatprep.subr.bf16.mxu1 %v3331_v54  ;;  %v2775_v46 = vld [vmem:[#allocation2 + $0x128] ss:$16 sps:$4 sm:$0xff]   ;;  %v2855_v54 = vmov 0.0  }
 0x66c   :  { %1273 = vmatprep.mubr.bf16.mxu0 %v3511_v0  ;;  %1314 = vmatprep.mubr.bf16.mxu1 %v3511_v0  ;;  %v2760_v0 = vld [vmem:[#allocation2 + $0xc4] ss:$16 sps:$4 sm:$0xff]  }
 0x66e   :  { %1244 = vmatpush1.bf16.msra.mxu0 %v3336_v55  ;;  %1285 = vmatpush1.bf16.msra.mxu1 %v3339_v14  ;;  %v1521_v55 = vld [vmem:[%s3487_s3] sm:$0x3] }
 0x66f   :  { %1245 = vmatprep.subr.bf16.mxu0 %v3342_v15  ;;  %1286 = vmatprep.subr.bf16.mxu1 %v2753_v59  ;;  %v2857_v59 = vmov 0.0|0.0  }
 0x670   :  { %1525 = vperm.xlu0 %2545, %v1521_v55   ;;  %v1572_v55 = vld [vmem:[#allocation5 + $0x1a8] sm:$0xff] }
 0x672   :  { %1246 = vmatpush1.bf16.msra.mxu0 %v2754_v11  ;;  %1287 = vmatpush1.bf16.msra.mxu1 %v2755_v13  ;;  %v1434_v11 = vld [vmem:[%s3486_s2] sm:$0x3] }
 0x673   :  { %1247 = vmatprep.subr.bf16.mxu0 %v2756_v8  ;;  %1288 = vmatprep.subr.bf16.mxu1 %v2757_v60  ;;  %v1351_v13 = vld [vmem:[%s3485_s1] sm:$0xff] }
 0x674   :  { %v1559_v60 = vld [vmem:[#allocation5 + $0x140] sm:$0xff] }
 0x676   :  { %1248 = vmatpush1.bf16.msra.mxu0 %v2758_v20  ;;  %1289 = vmatpush1.bf16.msra.mxu1 %v2759_v61  ;;  %v1560_v20 = vld [vmem:[#allocation5 + $0x148] sm:$0xff] }
 0x677   :  { %1249 = vmatprep.subr.bf16.mxu0 %v2760_v0  ;;  %1290 = vmatprep.subr.bf16.mxu1 %v2761_v62  ;;  %v2432_v61 = vpack.c.bf16 %v1560_v20, %v1559_v60  ;;  %v1561_v0 = vld [vmem:[#allocation5 + $0x150] sm:$0xff]  ;;  %v1562_v62 = vld [vmem:[#allocation5 + $0x158] sm:$0xff] }
 0x67a   :  { %1250 = vmatpush1.bf16.msra.mxu0 %v2762_v63  ;;  %1291 = vmatpush1.bf16.msra.mxu1 %v2763_v24  ;;  %v2435_v63 = vpack.c.bf16 %v1562_v62, %v1561_v0  ;;  %v1563_v24 = vld [vmem:[#allocation5 + $0x160] sm:$0xff] }
 0x67b   :  { %1251 = vmatprep.subr.bf16.mxu0 %v2764_v2  ;;  %1292 = vmatprep.subr.bf16.mxu1 %v2765_v3  ;;  %v1564_v2 = vld [vmem:[#allocation5 + $0x168] sm:$0xff] }
 0x67c   :  { %v2438_v3 = vpack.c.bf16 %v1564_v2, %v1563_v24  ;;  %v1713_v2 = vld [vmem:[#allocation5 + $0x1b0] sm:$0xff] }
 0x67e   :  { %1252 = vmatpush1.bf16.msra.mxu0 %v2766_v1  ;;  %1293 = vmatpush1.bf16.msra.mxu1 %v2767_v4  ;;  %v1565_v1 = vld [vmem:[#allocation5 + $0x170] sm:$0xff]  ;;  %v1566_v4 = vld [vmem:[#allocation5 + $0x178] sm:$0xff] }
 0x67f   :  { %1253 = vmatprep.subr.bf16.mxu0 %v2768_v21  ;;  %1294 = vmatprep.subr.bf16.mxu1 %v2769_v35  ;;  %v2441_v21 = vpack.c.bf16 %v1566_v4, %v1565_v1  ;;  %v1567_v35 = vld [vmem:[#allocation5 + $0x180] sm:$0xff] }
 0x682   :  { %1254 = vmatpush1.bf16.msra.mxu0 %v2770_v42  ;;  %1295 = vmatpush1.bf16.msra.mxu1 %v2771_v32  ;;  %v1568_v42 = vld [vmem:[#allocation5 + $0x188] sm:$0xff] }
 0x683   :  { %1255 = vmatprep.subr.bf16.mxu0 %v2772_v5  ;;  %1296 = vmatprep.subr.bf16.mxu1 %v2773_v53  ;;  %v2444_v32 = vpack.c.bf16 %v1568_v42, %v1567_v35  ;;  %v1569_v5 = vld [vmem:[#allocation5 + $0x190] sm:$0xff]  ;;  %v1570_v53 = vld [vmem:[#allocation5 + $0x198] sm:$0xff] }
 0x686   :  { %1256 = vmatpush1.bf16.msra.mxu0 %v2774_v31  ;;  %1297 = vmatpush1.bf16.msra.mxu1 %v2775_v46  ;;  %v2447_v31 = vpack.c.bf16 %v1570_v53, %v1569_v5  ;;  %v1571_v46 = vld [vmem:[#allocation5 + $0x1a0] sm:$0xff]  ;;  %v1716_v5 = vld [vmem:[#allocation5 + $0x1c8] sm:$0xff] }
 0x687   :  { %2278 = vmatprep.subr.mxu1 %v2855_v54  ;;  %2273 = vmatprep.subr.mxu0 %v2855_v54 }
 0x73c   :  { %v1164_v14 = vpop.f32.mrb[40].mxu0  ;;  %v1205_v15 = vpop.f32.mrb[40].mxu1 }
 0x73d   :  { %v1212_v25 = vadd.f32 %v1164_v14, %v3522_v23  ;;  %v1214_v27 = vadd.f32 %v1205_v15, %v3523_v26  ;;  %v1166_v28 = vpop.f32.mrb[41].mxu0  ;;  %v1207_v29 = vpop.f32.mrb[41].mxu1  ;;  %v2450_v14 = vpack.c.bf16 %v1572_v55, %v1571_v46  ;;  %v1541_v15 = vld [vmem:[#allocation5 + $0x30] sm:$0xff]  ;;  %v1542_v23 = vld [vmem:[#allocation5 + $0x38] sm:$0xff]  ;;  %v1543_v26 = vld [vmem:[#allocation5 + $0x40] sm:$0xff] }
 0x73e   :  { %v1213_v33 = vadd.f32 %v1166_v28, %v3524_v30  ;;  %v1215_v36 = vadd.f32 %v1207_v29, %v3525_v34  ;;  %v1168_v37 = vpop.f32.mrb[42].mxu0  ;;  %v1209_v38 = vpop.f32.mrb[42].mxu1  ;;  %v1545_v29 = vld [vmem:[#allocation5 + $0x50] sm:$0xff]  ;;  %v1546_v30 = vld [vmem:[#allocation5 + $0x58] sm:$0xff]  ;;  %v1547_v34 = vld [vmem:[#allocation5 + $0x60] sm:$0xff] }
 0x73f   :  { %v2182_v39 = vmul.f32 -1.442695, %v1212_v25  ;;  %v1169_v40 = vpop.f32.mrb[43].mxu0  ;;  %v1210_v41 = vpop.f32.mrb[43].mxu1  ;;  %v2453_v25 = vpack.c.bf16 %v1542_v23, %v1541_v15  ;;  %v1549_v38 = vld [vmem:[#allocation5 + $0x70] sm:$0xff]  ;;  %v1718_v23 = vld [vmem:[#allocation5 + $0x1d8] sm:$0xff] }
 0x740   :  { %v2183_v44 = vmul.f32 -1.442695, %v1213_v33  ;;  %v2184_v45 = vmul.f32 -1.442695, %v1215_v36  ;;  %v2459_v33 = vpack.c.bf16 %v1546_v30, %v1545_v29  ;;  %v1548_v36 = vld [vmem:[#allocation5 + $0x68] sm:$0xff]  ;;  %v1551_v41 = vld [vmem:[#allocation5 + $0x80] sm:$0xff] }
 0x741   :  { %2702 = vpow2.f32 %v2182_v39  ;;  %v2462_v37 = vpack.c.bf16 %v1548_v36, %v1547_v34  ;;  %v1550_v39 = vld [vmem:[#allocation5 + $0x78] sm:$0xff]  ;;  %v1717_v15 = vld [vmem:[#allocation5 + $0x1d0] sm:$0xff] }
 0x742   :  { %2704 = vpow2.f32 %v2183_v44  ;;  %v2465_v40 = vpack.c.bf16 %v1550_v39, %v1549_v38  ;;  %v1552_v44 = vld [vmem:[#allocation5 + $0x88] sm:$0xff]  ;;  %v1721_v29 = vld [vmem:[#allocation5 + $0x1f0] sm:$0xff]  ;;  %v1722_v30 = vld [vmem:[#allocation5 + $0x1f8] sm:$0xff]  ;;  %v1526_v39 = vpop.permute.xlu0 %1525 }
 0x743   :  { %2706 = vpow2.f32 %v2184_v45  ;;  %v2468_v45 = vpack.c.bf16 %v1552_v44, %v1551_v41  ;;  %v2193_v38 = vld [vmem:[#allocation5 + $0x20] ss:$0 sm:$0xff] }
 0x744   :  { %2708 = vtanh.f32 %v1214_v27  ;;  %v1544_v27 = vld [vmem:[#allocation5 + $0x48] sm:$0xff] }
 0x745   :  { %v2456_v28 = vpack.c.bf16 %v1544_v27, %v1543_v26  ;;  %v1719_v26 = vld [vmem:[#allocation5 + $0x1e0] sm:$0xff]  ;;  %v1720_v27 = vld [vmem:[#allocation5 + $0x1e8] sm:$0xff] }
 0x74b   :  { %v2703_v47 = vpop.eup %2702 }
 0x74c   :  { %v2705_v48 = vpop.eup %2704  ;;  %v1219_v49 = vadd.f32 1.0, %v2703_v47  ;;  %v1553_v47 = vld [vmem:[#allocation5 + $0x90] sm:$0xff] }
 0x74d   :  { %v1225_v50 = vadd.f32 1.0, %v2705_v48  ;;  %v2707_v51 = vpop.eup %2706  ;;  %v1554_v48 = vld [vmem:[#allocation5 + $0x98] sm:$0xff] }
 0x74e   :  { %2710 = vrcp.f32 %v1219_v49  ;;  %v2709_v52 = vpop.eup %2708  ;;  %v1232_v19 = vadd.f32 1.0, %v2707_v51  ;;  %v2471_v49 = vpack.c.bf16 %v1554_v48, %v1553_v47  ;;  %v1556_v51 = vld [vmem:[#allocation5 + $0xa8] sm:$0xff] }
 0x74f   :  { %2712 = vrcp.f32 %v1225_v50  ;;  %v1555_v50 = vld [vmem:[#allocation5 + $0xa0] sm:$0xff]  ;;  %v1724_v47 = vld [vmem:[#allocation5 + $0x208] sm:$0xff] }
 0x750   :  { %2714 = vrcp.f32 %v1232_v19 }
 0x758   :  { %v2711_v16 = vpop.eup %2710 }
 0x759   :  { %v2713_v17 = vpop.eup %2712  ;;  %v1236_v18 = vmul.f32 %v2711_v16, %v2709_v52  ;;  %v2474_v52 = vpack.c.bf16 %v1556_v51, %v1555_v50 }
 0x75a   :  { %v1235_v22 = vmul.f32 %v2713_v17, %v3373_v10  ;;  %v2715_v56 = vpop.eup %2714  ;;  %v1557_v10 = vld [vmem:[#allocation5 + $0x130] sm:$0xff] }
 0x75b   :  { %v2429_v8 = vpack.c.bf16 %v1558_v58, %v1557_v10 }
 0x75c   :  { %v3395_v43 = vadd.f32 %v1236_v18, %v1235_v22  ;;  %v3526_v18 = vld [vmem:[#allocation25_spill] sm:$0xff]  ;;  %v3527_v22 = vld [vmem:[#allocation26_spill] sm:$0xff] }
 0x75e   :  { %2716 = vtanh.f32 %v3395_v43 }
 0x768   :  { %v2717_v7 = vpop.eup %2716 }
 0x769   :  { %v1239_v9 = vmul.f32 %v2717_v7, %v2715_v56 }
 0x76b   :  { %v1240_v12 = vpack.c.bf16 %v1239_v9, %v1239_v9 }
 0x76d   :  { %1274 = vmatmul.mubr.bf16.vlgmr.msra.gmra.mrb[44].mxu0 %v1240_v12  ;;  %1315 = vmatmul.mubr.bf16.vlgmr.msra.gmra.mrb[44].mxu1 %v1240_v12  ;;  %v3528_v12 = vld [vmem:[#allocation27_spill] sm:$0xff] }
 0x76e   :  { %2279 = vmatpush3.msk.msra.mxu1 %vm1445_vm1, %v1435_v6  ;;  %2280 = vmatprep.mubr.msk.f32.mxu1 %vm2856_vm2, %v2855_v54 }
 0x76f   :  { %2274 = vmatpush3.msra.mxu0 %v1352_v57  ;;  %2275 = vmatprep.mubr.msk.f32.mxu0 %vm2856_vm2, %v2855_v54  ;;  %v3529_v57 = vld [vmem:[#allocation28_spill] sm:$0xff] }
 0x770   :  { %2428 = vmatprep.subr.bf16.mxu0 %v2857_v59  ;;  %2452 = vmatprep.subr.bf16.mxu1 %v2857_v59 }
 0x775   :  { %2281 = vmatmul.mubr.msk.f32.vlgmr.msra.gmra.mrb[48].mxu1 %vm1441_vm3, %v1434_v11  ;;  %2276 = vmatmul.mubr.msk.f32.vlgmr.msra.gmra.mrb[48].mxu0 %vm1358_vm4, %v1351_v13 }
 0x776   :  { %2430 = vmatpush3.bf16.msra.mxu0 %v2429_v8  ;;  %2315 = vmatprep.mubr.msk.f32.mxu0 %vm2856_vm2, %v2855_v54 }
 0x777   :  { %2431 = vmatprep.subr.bf16.mxu0 %v2857_v59  ;;  %2350 = vmatprep.mubr.msk.f32.mxu1 %vm2856_vm2, %v2855_v54 }
 0x778   :  { %2454 = vmatpush3.bf16.msra.mxu1 %v2453_v25  ;;  %v2483_v25 = vpack.c.bf16 %v1718_v23, %v1717_v15  ;;  %v1813_v15 = vld [vmem:[#allocation5 + $0xe8] sm:$0xff] }
 0x779   :  { %2455 = vmatprep.subr.bf16.mxu1 %v2857_v59 }
 0x77a   :  { %2433 = vmatpush3.bf16.msra.mxu0 %v2432_v61  ;;  %v2190_v61 = vld [vmem:[#allocation5 + $0x18] ss:$0 sm:$0xff] }
 0x77b   :  { %2434 = vmatprep.subr.bf16.mxu0 %v2857_v59 }
 0x77c   :  { %2457 = vmatpush3.bf16.msra.mxu1 %v2456_v28  ;;  %v2486_v28 = vpack.c.bf16 %v1720_v27, %v1719_v26  ;;  %v1815_v26 = vld [vmem:[#allocation5 + $0xf8] sm:$0xff] }
 0x77d   :  { %2458 = vmatprep.subr.bf16.mxu1 %v2857_v59 }
 0x77e   :  { %2436 = vmatpush3.bf16.msra.mxu0 %v2435_v63 }
 0x77f   :  { %2437 = vmatprep.subr.bf16.mxu0 %v2857_v59 }
 0x780   :  { %2460 = vmatpush3.bf16.msra.mxu1 %v2459_v33 }
 0x781   :  { %2461 = vmatprep.subr.bf16.mxu1 %v2857_v59 }
 0x782   :  { %2439 = vmatpush3.bf16.msra.mxu0 %v2438_v3  ;;  %v1714_v3 = vld [vmem:[#allocation5 + $0x1b8] sm:$0xff] }
 0x783   :  { %2440 = vmatprep.subr.bf16.mxu0 %v2857_v59  ;;  %v2477_v35 = vpack.c.bf16 %v1714_v3, %v1713_v2  ;;  %v2195_v2 = vld [vmem:[#allocation5 + $0x230] ss:$0 sm:$0xff] }
 0x784   :  { %2463 = vmatpush3.bf16.msra.mxu1 %v2462_v37  ;;  %v2489_v37 = vpack.c.bf16 %v1722_v30, %v1721_v29  ;;  %v1806_v3 = vld [vmem:[#allocation5 + $0xb0] sm:$0xff] }
 0x785   :  { %2464 = vmatprep.subr.bf16.mxu1 %v2857_v59  ;;  %v1818_v30 = vld [vmem:[#allocation5 + $0x110] sm:$0xff] }
 0x786   :  { %2442 = vmatpush3.bf16.msra.mxu0 %v2441_v21 }
 0x787   :  { %2443 = vmatprep.subr.bf16.mxu0 %v2857_v59 }
 0x788   :  { %2466 = vmatpush3.bf16.msra.mxu1 %v2465_v40 }
 0x789   :  { %2467 = vmatprep.subr.bf16.mxu1 %v2857_v59 }
 0x78a   :  { %2445 = vmatpush3.bf16.msra.mxu0 %v2444_v32  ;;  %v1715_v32 = vld [vmem:[#allocation5 + $0x1c0] sm:$0xff] }
 0x78b   :  { %2446 = vmatprep.subr.bf16.mxu0 %v2857_v59  ;;  %v2480_v55 = vpack.c.bf16 %v1716_v5, %v1715_v32  ;;  %v1808_v32 = vld [vmem:[#allocation5 + $0xc0] sm:$0xff]  ;;  %v1809_v5 = vld [vmem:[#allocation5 + $0xc8] sm:$0xff] }
 0x78c   :  { %2469 = vmatpush3.bf16.msra.mxu1 %v2468_v45  ;;  %v1723_v45 = vld [vmem:[#allocation5 + $0x200] sm:$0xff] }
 0x78d   :  { %2470 = vmatprep.subr.bf16.mxu1 %v2857_v59  ;;  %v2492_v51 = vpack.c.bf16 %v1724_v47, %v1723_v45 }
 0x78e   :  { %2448 = vmatpush3.bf16.msra.mxu0 %v2447_v31 }
 0x78f   :  { %2449 = vmatprep.subr.bf16.mxu0 %v2857_v59 }
 0x790   :  { %2472 = vmatpush3.bf16.msra.mxu1 %v2471_v49  ;;  %v1532_v49 = vmul.f32 %v2193_v38, %v1526_v39  ;;  %v1820_v38 = vld [vmem:[#allocation5 + $0x120] sm:$0xff]  ;;  %v1821_v39 = vld [vmem:[#allocation5 + $0x128] sm:$0xff] }
 0x791   :  { %2473 = vmatprep.subr.bf16.mxu1 %v2857_v59 }
 0x792   :  { %2451 = vmatpush3.bf16.msra.mxu0 %v2450_v14 }
 0x793   :  { %2476 = vmatprep.subr.bf16.mxu0 %v2857_v59 }
 0x794   :  { %2475 = vmatpush3.bf16.msra.mxu1 %v2474_v52  ;;  %v2194_v52 = vld [vmem:[#allocation5 + $0x28] ss:$0 sm:$0xff] }
 0x795   :  { %2388 = vmatprep.subr.mxu1 %v2855_v54 }
 0x840   :  { %v1275_v16 = vpop.f32.mrb[44].mxu0  ;;  %v1316_v17 = vpop.f32.mrb[44].mxu1 }
 0x841   :  { %v1323_v19 = vadd.f32 %v1275_v16, %v3526_v18  ;;  %v1325_v56 = vadd.f32 %v1316_v17, %v3527_v22  ;;  %v1277_v7 = vpop.f32.mrb[45].mxu0  ;;  %v1318_v9 = vpop.f32.mrb[45].mxu1  ;;  %v1725_v16 = vld [vmem:[#allocation5 + $0x210] sm:$0xff]  ;;  %v1726_v17 = vld [vmem:[#allocation5 + $0x218] sm:$0xff]  ;;  %v1538_v18 = vadd.f32 %v2194_v52, %v1532_v49  ;;  %v1727_v22 = vld [vmem:[#allocation5 + $0x220] sm:$0xff] }
 0x842   :  { %v1324_v6 = vadd.f32 %v1277_v7, %v3528_v12  ;;  %v1326_v10 = vadd.f32 %v1318_v9, %v3529_v57  ;;  %v1279_v58 = vpop.f32.mrb[46].mxu0  ;;  %v1320_v11 = vpop.f32.mrb[46].mxu1 }
 0x843   :  { %v2185_v13 = vmul.f32 -1.442695, %v1323_v19  ;;  %v1280_v8 = vpop.f32.mrb[47].mxu0  ;;  %v1321_v60 = vpop.f32.mrb[47].mxu1  ;;  %v2495_v19 = vpack.c.bf16 %v1726_v17, %v1725_v16  ;;  %v1539_v7 = vmul.f32 0.01, %v1538_v18  ;;  %v1822_v11 = vlaneseq }
 0x844   :  { %v2186_v20 = vmul.f32 -1.442695, %v1324_v6  ;;  %v2187_v21 = vmul.f32 -1.442695, %v1326_v10 }
 0x845   :  { %2718 = vpow2.f32 %v2185_v13  ;;  %v1540_v12 = vmax.f32 %v1538_v18, %v1539_v7  ;;  %v1823_v13 = vshrl.u32 %v1822_v11, 7  ;;  %v1837_v60 = vand.u32 127, %v1822_v11 }
 0x846   :  { %2720 = vpow2.f32 %v2186_v20 }
 0x847   :  { %2722 = vpow2.f32 %v2187_v21  ;;  %v1828_v8 = vand.u32 1, %v1823_v13 }
 0x848   :  { %v1515_v0 = vpop.f32.mrb[48].mxu1  ;;  %v3436_v62 = vpop.f32.mrb[48].mxu0  ;;  %2724 = vtanh.f32 %v1325_v56  ;;  %v1728_v56 = vld [vmem:[#allocation5 + $0x228] sm:$0xff] }
 0x849   :  { %v1516_v63 = vadd.f32 %v2190_v61, %v1515_v0  ;;  %v2282_v24 = vpop.f32.mrb[49].mxu1  ;;  %v2277_v1 = vpop.f32.mrb[49].mxu0  ;;  %vm1838_vm5 = vcmp.eq.s32.totalorder %v1828_v8, %v1837_v60 }
 0x84a   :  { %v1807_v1 = vld [vmem:[#allocation5 + $0xb8] sm:$0xff] }
 0x84b   :  { %v1519_v4 = vmul.f32 0.01, %v1516_v63 }
 0x84d   :  { %v1520_v42 = vmax.f32 %v1516_v63, %v1519_v4 }
 0x84f   :  { %v2719_v53 = vpop.eup %2718  ;;  %2316 = vmatmul.mubr.f32.vlgmr.msra.gmra.mrb[50].mxu0 %v1520_v42  ;;  %v2501_v42 = vpack.c.bf16 %v1807_v1, %v1806_v3 }
 0x850   :  { %v2721_v31 = vpop.eup %2720  ;;  %v1330_v46 = vadd.f32 1.0, %v2719_v53  ;;  %2478 = vmatpush3.bf16.msra.mxu0 %v2477_v35  ;;  %2385 = vmatprep.mubr.msk.f32.mxu0 %vm2856_vm2, %v2855_v54  ;;  %v2196_v35 = vsel %vm1838_vm5, 1.0, %v2855_v54  ;;  %v2504_v53 = vpack.c.bf16 %v1809_v5, %v1808_v32 }
 0x851   :  { %v1336_v14 = vadd.f32 1.0, %v2721_v31  ;;  %2479 = vmatprep.subr.bf16.mxu0 %v2857_v59  ;;  %v2723_v33 = vpop.eup %2722  ;;  %v1810_v31 = vld [vmem:[#allocation5 + $0xd0] sm:$0xff] }
 0x852   :  { %2726 = vrcp.f32 %v1330_v46  ;;  %v2725_v34 = vpop.eup %2724  ;;  %v1343_v44 = vadd.f32 1.0, %v2723_v33  ;;  %v1811_v46 = vld [vmem:[#allocation5 + $0xd8] sm:$0xff] }
 0x853   :  { %2728 = vrcp.f32 %v1336_v14  ;;  %v1812_v14 = vld [vmem:[#allocation5 + $0xe0] sm:$0xff]  ;;  %v1819_v33 = vld [vmem:[#allocation5 + $0x118] sm:$0xff] }
 0x854   :  { %2481 = vmatpush3.bf16.msra.mxu0 %v2480_v55  ;;  %2730 = vrcp.f32 %v1343_v44  ;;  %v2507_v55 = vpack.c.bf16 %v1811_v46, %v1810_v31  ;;  %v2510_v23 = vpack.c.bf16 %v1813_v15, %v1812_v14 }
 0x855   :  { %2482 = vmatprep.subr.bf16.mxu0 %v2857_v59 }
 0x858   :  { %2484 = vmatpush3.bf16.msra.mxu0 %v2483_v25  ;;  %v1814_v25 = vld [vmem:[#allocation5 + $0xf0] sm:$0xff] }
 0x859   :  { %2485 = vmatprep.subr.bf16.mxu0 %v2857_v59  ;;  %v2513_v27 = vpack.c.bf16 %v1815_v26, %v1814_v25 }
 0x85c   :  { %v2727_v36 = vpop.eup %2726  ;;  %2487 = vmatpush3.bf16.msra.mxu0 %v2486_v28  ;;  %v1817_v28 = vld [vmem:[#allocation5 + $0x108] sm:$0xff] }
 0x85d   :  { %v2729_v40 = vpop.eup %2728  ;;  %v1347_v41 = vmul.f32 %v2727_v36, %v2725_v34  ;;  %2488 = vmatprep.subr.bf16.mxu0 %v2857_v59  ;;  %v2188_v34 = vld [vmem:[#allocation5 + $0x8] ss:$0 sm:$0xff]  ;;  %v2519_v36 = vpack.c.bf16 %v1819_v33, %v1818_v30 }
 0x85e   :  { %v1346_v48 = vmul.f32 %v2729_v40, %v3395_v43  ;;  %v2498_v43 = vpack.c.bf16 %v1728_v56, %v1727_v22  ;;  %v2731_v9 = vpop.eup %2730  ;;  %v2522_v40 = vpack.c.bf16 %v1821_v39, %v1820_v38 }
 0x860   :  { %v1348_v50 = vadd.f32 %v1347_v41, %v1346_v48  ;;  %2490 = vmatpush3.bf16.msra.mxu0 %v2489_v37  ;;  %v1429_v37 = vadd.f32 %v2188_v34, %v3436_v62 }
 0x861   :  { %2491 = vmatprep.subr.bf16.mxu0 %v2857_v59 }
 0x862   :  { %2732 = vtanh.f32 %v1348_v50  ;;  %v1432_v41 = vmul.f32 0.01, %v1429_v37 }
 0x864   :  { %2493 = vmatpush3.bf16.msra.mxu0 %v2492_v51  ;;  %v1433_v44 = vmax.f32 %v1429_v37, %v1432_v41 }
 0x865   :  { %2494 = vmatprep.subr.bf16.mxu0 %v2857_v59 }
 0x868   :  { %2496 = vmatpush3.bf16.msra.mxu0 %v2495_v19 }
 0x869   :  { %2497 = vmatprep.subr.bf16.mxu0 %v2857_v59 }
 0x86c   :  { %v2733_v6 = vpop.eup %2732  ;;  %2499 = vmatpush3.bf16.msra.mxu0 %v2498_v43 }
 0x86d   :  { %v1350_v57 = vmul.f32 %v2733_v6, %v2731_v9 }
 0x86f   :  { %2386 = vmatmul.mubr.f32.vlgmr.msra.gmra.mrb[52].mxu0 %v1540_v12  ;;  %2351 = vmatmul.mubr.f32.vlgmr.msra.gmra.mrb[50].mxu1 %v1350_v57 }
 0x870   :  { %2390 = vmatprep.mubr.msk.f32.mxu1 %vm2856_vm2, %v2855_v54 }
 0x922   :  { %v1639_v10 = vpop.f32.mrb[50].mxu0 }
 0x923   :  { %v2317_v58 = vpop.f32.mrb[51].mxu0 }
 0x942   :  { %v1795_v20 = vpop.f32.mrb[52].mxu0  ;;  %v1709_v61 = vpop.f32.mrb[50].mxu1 }
 0x943   :  { %v1710_v0 = vadd.f32 %v1709_v61, %v1639_v10  ;;  %v2387_v63 = vpop.f32.mrb[53].mxu0  ;;  %v2352_v24 = vpop.f32.mrb[51].mxu1 }
 0x945   :  { %v1799_v4 = vadd.f32 %v1795_v20, %v1710_v0 }
 0x947   :  { %v1805_v21 = vadd.f32 %v2195_v2, %v1799_v4 }
 0x949   :  { %2389 = vmatpush3.msk.msra.mxu1 %vm1445_vm1, %v1805_v21 }
 0x94a   :  { %2500 = vmatprep.subr.bf16.mxu1 %v2857_v59  ;;  %2391 = vmatmul.mubr.msk.f32.vlgmr.msra.gmra.mrb[52].mxu1 %vm1441_vm3, %v2196_v35 }
 0x94b   :  { %2502 = vmatpush3.bf16.msra.mxu1 %v2501_v42  ;;  %2425 = vmatprep.mubr.msk.f32.mxu1 %vm2856_vm2, %v2855_v54  ;;  %v1816_v54 = vld [vmem:[#allocation5 + $0x100] sm:$0xff] }
 0x94c   :  { %2503 = vmatprep.subr.bf16.mxu1 %v2857_v59  ;;  %v2516_v29 = vpack.c.bf16 %v1817_v28, %v1816_v54 }
 0x94f   :  { %2505 = vmatpush3.bf16.msra.mxu1 %v2504_v53 }
 0x950   :  { %2506 = vmatprep.subr.bf16.mxu1 %v2857_v59 }
 0x953   :  { %2508 = vmatpush3.bf16.msra.mxu1 %v2507_v55 }
 0x954   :  { %2509 = vmatprep.subr.bf16.mxu1 %v2857_v59 }
 0x957   :  { %2511 = vmatpush3.bf16.msra.mxu1 %v2510_v23 }
 0x958   :  { %2512 = vmatprep.subr.bf16.mxu1 %v2857_v59 }
 0x95b   :  { %2514 = vmatpush3.bf16.msra.mxu1 %v2513_v27 }
 0x95c   :  { %2515 = vmatprep.subr.bf16.mxu1 %v2857_v59 }
 0x95f   :  { %2517 = vmatpush3.bf16.msra.mxu1 %v2516_v29 }
 0x960   :  { %2518 = vmatprep.subr.bf16.mxu1 %v2857_v59 }
 0x963   :  { %2520 = vmatpush3.bf16.msra.mxu1 %v2519_v36 }
 0x964   :  { %2521 = vmatprep.subr.bf16.mxu1 %v2857_v59 }
 0x967   :  { %2523 = vmatpush3.bf16.msra.mxu1 %v2522_v40 }
 0x96a   :  { %2426 = vmatmul.mubr.f32.vlgmr.msra.gmra.mrb[52].mxu1 %v1433_v44 }
 0xa3d   :  { %v1983_v45 = vpop.f32.mrb[52].mxu1 }
 0xa3e   :  { %v1987_v47 = vmul.f32 0.01, %v1983_v45  ;;  %v2427_v48 = vpop.f32.mrb[53].mxu1 }
 0xa40   :  { %v3464_v49 = vmax.f32 %v1983_v45, %v1987_v47 }
 0xa42   :  { %v1989_v62 = vmul.f32 %v3464_v49, %v3464_v49 }
 0xa44   :  { %1990 = vadd.xlane.f32.xlu0 %v1989_v62 }
 0xad1   :  { %v1991_v50 = vpop.xlane.xlu0 %1990 }
 0xad2   :  { %v1993_v51 = vsel %vm1992_vm6, %v1991_v50, 0.0  ;;  %v2016_v52 = vrot.slane %v1991_v50, 2  ;;  %v2043_v17 = vrot.slane %v1991_v50, 4  ;;  %v2070_v18 = vrot.slane %v1991_v50, 6 }
 0xad3   :  { %1994 = vadd.xlane.f32.xlu1 %v1993_v51 }
 0xad4   :  { %v2018_v16 = vsel %vm1992_vm6, %v2016_v52, 0.0  ;;  %v2045_v59 = vsel %vm1992_vm6, %v2043_v17, 0.0  ;;  %v2072_v19 = vsel %vm1992_vm6, %v2070_v18, 0.0 }
 0xad7   :  { %2019 = vadd.xlane.f32.xlu1 %v2018_v16 }
 0xadb   :  { %2046 = vadd.xlane.f32.xlu1 %v2045_v59 }
 0xadf   :  { %2073 = vadd.xlane.f32.xlu1 %v2072_v19 }
 0xb60   :  { %v1995_v22 = vpop.xlane.xlu1 %1994 }
 0xb61   :  { %v1996_v56 = vrot.slane %v1995_v22, 4 }
 0xb63   :  { %v1997_v7 = vadd.f32 %v1996_v56, %v1995_v22 }
 0xb64   :  { %v2020_v43 = vpop.xlane.xlu1 %2019 }
 0xb65   :  { %v1998_v9 = vrot.slane %v1997_v7, 2  ;;  %v2021_v12 = vrot.slane %v2020_v43, 4 }
 0xb67   :  { %v2022_v6 = vadd.f32 %v2021_v12, %v2020_v43  ;;  %v1999_v57 = vadd.f32 %v1998_v9, %v1997_v7 }
 0xb68   :  { %v2047_v10 = vpop.xlane.xlu1 %2046 }
 0xb69   :  { %v2023_v58 = vrot.slane %v2022_v6, 2  ;;  %v2048_v11 = vrot.slane %v2047_v10, 4  ;;  %v2000_v13 = vrot.slane %v1999_v57, 1 }
 0xb6b   :  { %v2049_v8 = vadd.f32 %v2048_v11, %v2047_v10  ;;  %v2001_v60 = vadd.f32 %v2000_v13, %v1999_v57  ;;  %v2024_v20 = vadd.f32 %v2023_v58, %v2022_v6 }
 0xb6c   :  { %v2074_v61 = vpop.xlane.xlu1 %2073 }
 0xb6d   :  { %v2050_v0 = vrot.slane %v2049_v8, 2  ;;  %v2075_v63 = vrot.slane %v2074_v61, 4  ;;  %2526 = vpush %v2001_v60  ;;  %v2025_v24 = vrot.slane %v2024_v20, 1 }
 0xb6f   :  { %v2076_v2 = vadd.f32 %v2075_v63, %v2074_v61  ;;  %v2026_v3 = vadd.f32 %v2025_v24, %v2024_v20  ;;  %v2051_v1 = vadd.f32 %v2050_v0, %v2049_v8 }
 0xb71   :  { %v2077_v4 = vrot.slane %v2076_v2, 2  ;;  %2528 = vpush %v2026_v3  ;;  %v2052_v21 = vrot.slane %v2051_v1, 1 }
 0xb73   :  { %v2078_v35 = vadd.f32 %v2077_v4, %v2076_v2  ;;  %v2053_v42 = vadd.f32 %v2052_v21, %v2051_v1 }
 0xb75   :  { %2530 = vpush %v2053_v42  ;;  %v2079_v32 = vrot.slane %v2078_v35, 1 }
 0xb77   :  { %v2080_v5 = vadd.f32 %v2079_v32, %v2078_v35 }
 0xb79   :  { %2532 = vpush %v2080_v5 }
 0xb9e   :  { %s2527_s1 = spop %2526 }
 0xb9f   :  { %v2003_v53 = vstv %s2527_s1 }
 0xba0   :  { %v2004_v31 = vadd.f32 1.0, %v2003_v53 }
 0xba2   :  { %s2529_s2 = spop %2528  ;;  %2734 = vrsqrt.f32 %v2004_v31  ;;  %vm2007_vm8 = vcmp.eq.f32.partialorder %v2004_v31, inf  ;;  %v2010_v37 = vand.u32 2147483648, %v2004_v31  ;;  %vm2009_vm11 = vcmp.eq.f32.partialorder %v2004_v31, 0.0 }
 0xba3   :  { %v2028_v46 = vstv %s2529_s2 }
 0xba4   :  { %v2029_v55 = vadd.f32 1.0, %v2028_v46 }
 0xba6   :  { %2736 = vrsqrt.f32 %v2029_v55  ;;  %s2531_s19 = spop %2530  ;;  %vm2032_vm7 = vcmp.eq.f32.partialorder %v2029_v55, inf  ;;  %v2035_v33 = vand.u32 2147483648, %v2029_v55  ;;  %vm2034_vm9 = vcmp.eq.f32.partialorder %v2029_v55, 0.0 }
 0xba7   :  { %v2055_v14 = vstv %s2531_s19 }
 0xba8   :  { %v2056_v15 = vadd.f32 1.0, %v2055_v14 }
 0xbaa   :  { %2738 = vrsqrt.f32 %v2056_v15  ;;  %s2533_s20 = spop %2532  ;;  %vm2059_vm10 = vcmp.eq.f32.partialorder %v2056_v15, inf  ;;  %v2062_v39 = vand.u32 2147483648, %v2056_v15  ;;  %vm2061_vm12 = vcmp.eq.f32.partialorder %v2056_v15, 0.0 }
 0xbab   :  { %v2082_v23 = vstv %s2533_s20 }
 0xbac   :  { %v2083_v25 = vadd.f32 1.0, %v2082_v23  ;;  %v2735_v26 = vpop.eup %2734 }
 0xbad   :  { %v2006_v54 = vmul.f32 %v2735_v26, %v2004_v31 }
 0xbae   :  { %2740 = vrsqrt.f32 %v2083_v25  ;;  %vm2086_vm13 = vcmp.eq.f32.partialorder %v2083_v25, inf  ;;  %v2089_v62 = vand.u32 2147483648, %v2083_v25  ;;  %vm2088_vm14 = vcmp.eq.f32.partialorder %v2083_v25, 0.0 }
 0xbaf   :  { %v2008_v34 = vsel %vm2007_vm8, %v2004_v31, %v2006_v54 }
 0xbb0   :  { %v2737_v27 = vpop.eup %2736  ;;  %v2011_v44 = vsel %vm2009_vm11, %v2010_v37, %v2008_v34 }
 0xbb1   :  { %v2031_v28 = vmul.f32 %v2737_v27, %v2029_v55  ;;  %v2012_v22 = vmul.f32 %v2011_v44, %v3464_v49 }
 0xbb3   :  { %v2033_v29 = vsel %vm2032_vm7, %v2029_v55, %v2031_v28 }
 0xbb4   :  { %v2739_v30 = vpop.eup %2738  ;;  %v2036_v38 = vsel %vm2034_vm9, %v2035_v33, %v2033_v29 }
 0xbb5   :  { %v2058_v36 = vmul.f32 %v2739_v30, %v2056_v15  ;;  %v2042_v47 = vadd.f32 %v2036_v38, %v2011_v44  ;;  %v2037_v52 = vmul.f32 %v2036_v38, %v3464_v49 }
 0xbb7   :  { %v2060_v40 = vsel %vm2059_vm10, %v2056_v15, %v2058_v36  ;;  %v2039_v18 = vrot.slane %v2037_v52, 2 }
 0xbb8   :  { %v2741_v41 = vpop.eup %2740  ;;  %v2063_v45 = vsel %vm2061_vm12, %v2062_v39, %v2060_v40 }
 0xbb9   :  { %v2085_v48 = vmul.f32 %v2741_v41, %v2083_v25  ;;  %v2069_v50 = vadd.f32 %v2063_v45, %v2042_v47  ;;  %v2064_v59 = vmul.f32 %v2063_v45, %v3464_v49  ;;  %v2041_v7 = vadd.f32 %v2039_v18, %v2012_v22 }
 0xbbb   :  { %v2087_v51 = vsel %vm2086_vm13, %v2083_v25, %v2085_v48  ;;  %v2066_v56 = vrot.slane %v2064_v59, 4 }
 0xbbc   :  { %v2090_v16 = vsel %vm2088_vm14, %v2089_v62, %v2087_v51 }
 0xbbd   :  { %v2096_v17 = vadd.f32 %v2090_v16, %v2069_v50  ;;  %v2091_v19 = vmul.f32 %v2090_v16, %v3464_v49  ;;  %v2068_v9 = vadd.f32 %v2066_v56, %v2041_v7 }
 0xbbf   :  { %2742 = vrcp.f32 %v2096_v17  ;;  %v2093_v43 = vrot.slane %v2091_v19, 6 }
 0xbc1   :  { %v2095_v12 = vadd.f32 %v2093_v43, %v2068_v9 }
 0xbc9   :  { %v2743_v6 = vpop.eup %2742 }
 0xbca   :  { %v2098_v57 = vmul.f32 %v2743_v6, %v2095_v12 }
 0xbcc   :  { %2099 = vst [vmem:[#allocation7] sm:$0x3] %v2098_v57 }
 0xbcd   :  { %2831 = shalt.err (!%p2828_p6)
}
 0xbce   :  { %s2832_s24 = scalar_lea.hbm %s3490_s6, 32 }
 0xbcf   :  { %p2833_p7 = scmp.ne.s32.totalorder %s3490_s6, %s2832_s24  ;;  %p2836_p8 = scmp.lt.u32.totalorder %s2832_s24, %s3490_s6 }
 0xbd1   :  { %p2838_p9 = pnand %p2836_p8, %p2833_p7 }
 0xbd3   :  { %2841 = shalt.err (!%p2838_p9)
}
 0xbd4   :  { %2109 = dma.vmem_to_hbm [thread:$0]  %s2107_s21, 32, %s3490_s6, [#allocation4]  }
 0xbd5   :  { %2846 = dma.done.wait [#allocation4], 32  }
 0xbd6   :  { %2847 = vsyncadd [#allocation4], 4294967264 }
 0xbd7   :  { %2113 = vsyncpa [#allocation3], 1 }
 0xbd8   :  { %2114 = vsyncpa [#allocation6], 1 }
 0xbd9   :  { %2115 = vsyncpa [#allocation4], 1 }

</bundles_post_ra>
